<compile_context>
chip_gen: v6e
topology: v6e:2x2x1
jax: 0.10.0
libtpu: 0.0.40
codegen_flags: <defaults>
</compile_context>

<pallas_src>
import functools

import numpy as np

import jax
import jax.numpy as jnp
from jax.experimental import pallas as pl
from jax.experimental.pallas import tpu as pltpu


_NEG = -1e9  # padded-lane softmax bias: exp(_NEG - max) == 0 exactly in f32


def _round_up(n, m):
    return ((n + m - 1) // m) * m


def _layer_defs(x_dim):
    """(name, padded fan-in, padded fan-out) — all spans are multiples of 128."""
    xp = _round_up(x_dim, 128)
    return (
        ("w1", xp, 128),        # Linear(x_dim, 64)
        ("w2", 128, 128),       # Linear(64, 128)
        ("w3", 128, 128),       # Linear(128, 64)
        ("wio", 128, xp + 128),  # fused input_mask_l (64->x_dim) + output_mask_l (64->3)
        ("r1", xp, 256),        # Linear(x_dim, 200)
        ("r2", 256, 256),       # Linear(200, 200)
        ("r3", 256, 128),       # Linear(200, 10)
        ("r4", 128, 128),       # Linear(10, 3)
    )


# --------------------------------------------------------------------------- #
# Kernel
# --------------------------------------------------------------------------- #
def _attention_nn_dual_kernel(x_ref, w_ref, b_ref, o_ref, *, layout, xp,
                              relu_in_bf16):
    x_f32 = x_ref[...]                       # (TB, xp) f32, lanes >= x_dim are zero

    def dense(h_bf16, name):
        off, kpad, npad, brow = layout[name]
        w = w_ref[off:off + kpad, 0:npad]    # bf16, (16,128)-tile-aligned slice
        b = b_ref[brow:brow + 1, 0:npad]     # f32 (1, npad)
        acc = jnp.dot(h_bf16, w, preferred_element_type=jnp.float32)  # MXU, f32 acc
        return acc + b                       # bias add stays f32 (accumulator dtype)

    def relu_cast(h_f32):
        # relu(bf16(x)) == bf16(relu(x)) exactly (rounding is monotone, bf16(0)=0),
        # so doing the max in bf16 halves VPU vreg count on v6e/v7x with zero
        # numerical change.  v5e has no bf16 VALU -> keep the max in f32 there.
        if relu_in_bf16:
            return jnp.maximum(h_f32.astype(jnp.bfloat16), 0)
        return jnp.maximum(h_f32, 0.0).astype(jnp.bfloat16)

    def softmax(z):                          # lane-axis softmax over a padded span
        z = z - jnp.max(z, axis=-1, keepdims=True)
        e = jnp.exp(z)                       # padded lanes: exp(-1e9 - m) == 0
        inv = pl.reciprocal(jnp.sum(e, axis=-1, keepdims=True), approx=True)
        return e * inv

    xb = x_f32.astype(jnp.bfloat16)

    # --- mask_layers: Linear->ReLU->Linear->(Dropout)->ReLU->Linear->(Dropout)->ReLU
    h = relu_cast(dense(xb, "w1"))
    h = relu_cast(dense(h, "w2"))            # Dropout(p=0.35) -> identity (eval)
    mask = relu_cast(dense(h, "w3"))         # Dropout(p=0.35) -> identity (eval)

    # --- fused input/output mask heads; each softmax runs over its own padded span
    io = dense(mask, "wio")                  # (TB, xp+128) f32
    in_mask = softmax(io[:, 0:xp])           # (TB, xp), lanes >= x_dim are exact 0
    out_mask = softmax(io[:, xp:xp + 128])   # (TB, 128), lanes >= 3 are exact 0

    wx = (in_mask * x_f32).astype(jnp.bfloat16)   # padded lanes stay 0

    # --- reg_layers: Linear->ReLU->Linear->ReLU->Linear->ReLU->Linear->Tanh
    g = relu_cast(dense(wx, "r1"))
    g = relu_cast(dense(g, "r2"))            # Dropout -> identity (eval)
    g = relu_cast(dense(g, "r3"))            # Dropout -> identity (eval)
    g = jnp.tanh(dense(g, "r4"))             # (TB, 128) f32, lanes >= 3 are 0

    # Lane-dense store: lanes 3..127 are exact zeros; wrapper slices [:, :3].
    o_ref[...] = (out_mask * g).astype(o_ref.dtype)


# --------------------------------------------------------------------------- #
# Parameter packing (2 resident slabs for all 17 weight/bias tensors)
# --------------------------------------------------------------------------- #
def pack_params(params, x_dim):
    xp = _round_up(x_dim, 128)
    layers = _layer_defs(x_dim)
    wcols = max(n for _, _, n in layers)     # 256 for x_dim <= 128

    layout = {}
    row = 0
    for i, (name, kpad, npad) in enumerate(layers):
        layout[name] = (row, kpad, npad, i)
        row += kpad                          # every offset is a multiple of 128
    brows = _round_up(len(layers), 8)

    wpack = np.zeros((row, wcols), np.float32)
    bpack = np.zeros((brows, wcols), np.float32)

    for name, (off, kpad, npad, brow) in layout.items():
        if name == "wio":                    # fuse input_mask_l and output_mask_l
            wi = np.asarray(params["wi"])
            wo = np.asarray(params["wo"])
            wpack[off:off + wi.shape[0], 0:wi.shape[1]] = wi
            wpack[off:off + wo.shape[0], xp:xp + wo.shape[1]] = wo
            bpack[brow, 0:wi.shape[1]] = np.asarray(params["b_wi"])
            bpack[brow, xp:xp + wo.shape[1]] = np.asarray(params["b_wo"])
            # Large-negative bias in the padded lanes of both softmax heads so the
            # padded-width softmax equals the real one (exp of padded lanes == 0).
            bpack[brow, wi.shape[1]:xp] = _NEG
            bpack[brow, xp + wo.shape[1]:xp + 128] = _NEG
        else:
            w = np.asarray(params[name])
            b = np.asarray(params["b_" + name])
            wpack[off:off + w.shape[0], 0:w.shape[1]] = w
            bpack[brow, 0:w.shape[1]] = b

    return (jnp.asarray(wpack, dtype=jnp.bfloat16),
            jnp.asarray(bpack, dtype=jnp.float32),
            layout)


# --------------------------------------------------------------------------- #
# Wrapper
# --------------------------------------------------------------------------- #
def _pick_tb(batch, tb_max=512, tb_min=128, min_steps=4):
    """Prefer big tiles (amortize ~0.35us/step) but keep >= min_steps grid steps so
    the software pipeline overlaps DMA with compute and both v7x TCs get work."""
    tb = tb_max
    while tb > tb_min and pl.cdiv(batch, tb) < min_steps:
        tb //= 2
    return tb


def _relu_in_bf16_default():
    try:
        kind = jax.devices()[0].device_kind.lower()
    except Exception:
        return False
    return ("v6" in kind) or ("v7" in kind)   # v5e has no bf16 VALU path


def attention_nn_dual_forward(x, wpack, bpack, layout, *, x_dim, tb=None,
                              relu_in_bf16=None):
    """x: (B, x_dim) f32.  tb: batch tile (None -> auto-pick, sweep 256-2048)."""
    b, d = x.shape
    assert d == x_dim
    xp = _round_up(x_dim, 128)
    if tb is None:
        tb = _pick_tb(b)
    if relu_in_bf16 is None:
        relu_in_bf16 = _relu_in_bf16_default()

    bp = _round_up(b, tb)
    # Lane-dense input: pad features to a 128-lane multiple (padded lanes are zero)
    # and the batch to a tile multiple (padded rows are sliced off below).
    x = jnp.pad(x, ((0, bp - b), (0, xp - d)))

    kernel = functools.partial(_attention_nn_dual_kernel, layout=layout, xp=xp,
                               relu_in_bf16=relu_in_bf16)

    out = pl.pallas_call(
        kernel,
        out_shape=jax.ShapeDtypeStruct((bp, 128), jnp.float32),
        grid=(bp // tb,),
        in_specs=[
            pl.BlockSpec((tb, xp), lambda i: (i, 0)),      # activations: pipelined
            pl.BlockSpec(wpack.shape, lambda i: (0, 0)),   # weight slab: resident
            pl.BlockSpec(bpack.shape, lambda i: (0, 0)),   # bias slab: resident
        ],
        out_specs=pl.BlockSpec((tb, 128), lambda i: (i, 0)),   # lane-dense output
        compiler_params=pltpu.CompilerParams(
            dimension_semantics=("parallel",),             # megacore split on v7x
        ),
    )(x, wpack, bpack)
    return out[:b, :3]


# --------------------------------------------------------------------------- #
# Init + references
# --------------------------------------------------------------------------- #
def _kaiming_uniform(key, fan_in, fan_out):
    # torch kaiming_uniform_(mode='fan_in', nonlinearity='relu'), stored as (in, out).
    bound = jnp.sqrt(2.0) * jnp.sqrt(3.0 / fan_in)
    return jax.random.uniform(key, (fan_in, fan_out), jnp.float32, -bound, bound)


def init_params(key, x_dim):
    dims = (("w1", x_dim, 64), ("w2", 64, 128), ("w3", 128, 64),
            ("wi", 64, x_dim), ("wo", 64, 3),
            ("r1", x_dim, 200), ("r2", 200, 200), ("r3", 200, 10), ("r4", 10, 3))
    params = {}
    keys = jax.random.split(key, 2 * len(dims))
    for i, (name, fi, fo) in enumerate(dims):
        params[name] = _kaiming_uniform(keys[2 * i], fi, fo)
        # The original torch init sets biases to 0; small random biases are used
        # here only so the bias path of the kernel is actually exercised.
        params["b_" + name] = jax.random.uniform(
            keys[2 * i + 1], (fo,), jnp.float32, -0.1, 0.1)
    return params


def reference_forward(x, p, *, bf16_matmuls):
    def dense(h, w, b):
        if bf16_matmuls:
            h = h.astype(jnp.bfloat16)
            w = w.astype(jnp.bfloat16)
        return jnp.dot(h, w, preferred_element_type=jnp.float32) + b

    def softmax(z):
        z = z - jnp.max(z, axis=-1, keepdims=True)
        e = jnp.exp(z)
        return e / jnp.sum(e, axis=-1, keepdims=True)

    h = jax.nn.relu(dense(x, p["w1"], p["b_w1"]))
    h = jax.nn.relu(dense(h, p["w2"], p["b_w2"]))
    mask = jax.nn.relu(dense(h, p["w3"], p["b_w3"]))
    in_mask = softmax(dense(mask, p["wi"], p["b_wi"]))
    out_mask = softmax(dense(mask, p["wo"], p["b_wo"]))
    wx = in_mask * x
    g = jax.nn.relu(dense(wx, p["r1"], p["b_r1"]))
    g = jax.nn.relu(dense(g, p["r2"], p["b_r2"]))
    g = jax.nn.relu(dense(g, p["r3"], p["b_r3"]))
    g = jnp.tanh(dense(g, p["r4"], p["b_r4"]))
    return out_mask * g


if __name__ == "__main__":
    x_dim = 32
    batch = 400        # not a tile multiple: exercises padding; auto-tb -> 128, 4 steps

    key = jax.random.PRNGKey(0)
    k_params, k_x = jax.random.split(key)
    params = init_params(k_params, x_dim)
    x = jax.random.normal(k_x, (batch, x_dim), dtype=jnp.float32)

    wpack, bpack, layout = pack_params(params, x_dim)
    out = attention_nn_dual_forward(x, wpack, bpack, layout, x_dim=x_dim)
    out = jax.block_until_ready(out)

    # Matched-precision reference (bf16 matmul operands, f32 accumulate) — tight check
    # (only pl.reciprocal(approx=True) in the softmax denominators differs, ~1e-3 rel).
    ref_bf16 = reference_forward(x, params, bf16_matmuls=True)
    # Full-f32 reference — loose sanity check vs. the original module's precision.
    ref_f32 = reference_forward(x, params, bf16_matmuls=False)

    assert out.shape == (batch, 3)
    assert bool(jnp.all(jnp.isfinite(out)))
    assert jnp.allclose(out, ref_bf16, atol=1e-2, rtol=1e-2), "mismatch vs bf16 reference"
    assert jnp.allclose(out, ref_f32, atol=7e-2, rtol=7e-2), "mismatch vs f32 reference"

    print("KERNEL_OK")
</pallas_src>

<mosaic_0001>
module attributes {stable_mosaic.version = 11 : i64} {
  func.func @_attention_nn_dual_kernel(%arg0: i32, %arg1: memref<128x128xf32, #tpu.memory_space<vmem>>, %arg2: memref<1280x256xbf16, #tpu.memory_space<vmem>>, %arg3: memref<8x256xf32, #tpu.memory_space<vmem>>, %arg4: memref<128x128xf32, #tpu.memory_space<vmem>>) attributes {dimension_semantics = [#tpu.dimension_semantics<parallel>], iteration_bounds = array<i64: 4>, scalar_prefetch = 0 : i64, scratch_operands = 0 : i64, tpu.core_type = #tpu.core_type<tc>, window_params = [{transform_indices = @transform_0, window_bounds = array<i64: 128, 128>}, {pipeline_mode = #tpu.pipeline_mode<synchronous>, transform_indices = @transform_1, window_bounds = array<i64: 1280, 256>}, {pipeline_mode = #tpu.pipeline_mode<synchronous>, transform_indices = @transform_2, window_bounds = array<i64: 8, 256>}, {transform_indices = @transform_3, window_bounds = array<i64: 128, 128>}]} {
    %c0 = arith.constant 0 : index
    %c0_0 = arith.constant 0 : index
    %0 = vector.load %arg1[%c0, %c0_0] : memref<128x128xf32, #tpu.memory_space<vmem>>, vector<128x128xf32>
    %1 = arith.truncf %0 : vector<128x128xf32> to vector<128x128xbf16>
    %c0_1 = arith.constant 0 : index
    %c0_2 = arith.constant 0 : index
    %2 = vector.load %arg2[%c0_1, %c0_2] : memref<1280x256xbf16, #tpu.memory_space<vmem>>, vector<128x128xbf16>
    %c0_3 = arith.constant 0 : index
    %c0_4 = arith.constant 0 : index
    %3 = vector.load %arg3[%c0_3, %c0_4] : memref<8x256xf32, #tpu.memory_space<vmem>>, vector<1x128xf32>
    %cst = arith.constant dense<0.000000e+00> : vector<128x128xf32>
    %4 = tpu.matmul %1, %2, %cst {dimension_numbers = #tpu.dot_dimension_numbers<[1], [0], [0], [1], [0, 0, 1, 1], [], []>} : vector<128x128xbf16>, vector<128x128xbf16>, vector<128x128xf32> -> vector<128x128xf32>
    %5 = vector.broadcast %3 : vector<1x128xf32> to vector<128x128xf32>
    %6 = arith.addf %4, %5 : vector<128x128xf32>
    %cst_5 = arith.constant 0.000000e+00 : f32
    %7 = vector.broadcast %cst_5 : f32 to vector<128x128xf32>
    %8 = arith.maximumf %6, %7 : vector<128x128xf32>
    %9 = arith.truncf %8 : vector<128x128xf32> to vector<128x128xbf16>
    %c128 = arith.constant 128 : index
    %c0_6 = arith.constant 0 : index
    %10 = vector.load %arg2[%c128, %c0_6] : memref<1280x256xbf16, #tpu.memory_space<vmem>>, vector<128x128xbf16>
    %c1 = arith.constant 1 : index
    %c0_7 = arith.constant 0 : index
    %11 = vector.load %arg3[%c1, %c0_7] : memref<8x256xf32, #tpu.memory_space<vmem>>, vector<1x128xf32>
    %cst_8 = arith.constant dense<0.000000e+00> : vector<128x128xf32>
    %12 = tpu.matmul %9, %10, %cst_8 {dimension_numbers = #tpu.dot_dimension_numbers<[1], [0], [0], [1], [0, 0, 1, 1], [], []>} : vector<128x128xbf16>, vector<128x128xbf16>, vector<128x128xf32> -> vector<128x128xf32>
    %13 = vector.broadcast %11 : vector<1x128xf32> to vector<128x128xf32>
    %14 = arith.addf %12, %13 : vector<128x128xf32>
    %cst_9 = arith.constant 0.000000e+00 : f32
    %15 = vector.broadcast %cst_9 : f32 to vector<128x128xf32>
    %16 = arith.maximumf %14, %15 : vector<128x128xf32>
    %17 = arith.truncf %16 : vector<128x128xf32> to vector<128x128xbf16>
    %c256 = arith.constant 256 : index
    %c0_10 = arith.constant 0 : index
    %18 = vector.load %arg2[%c256, %c0_10] : memref<1280x256xbf16, #tpu.memory_space<vmem>>, vector<128x128xbf16>
    %c2 = arith.constant 2 : index
    %c0_11 = arith.constant 0 : index
    %19 = vector.load %arg3[%c2, %c0_11] : memref<8x256xf32, #tpu.memory_space<vmem>>, vector<1x128xf32>
    %cst_12 = arith.constant dense<0.000000e+00> : vector<128x128xf32>
    %20 = tpu.matmul %17, %18, %cst_12 {dimension_numbers = #tpu.dot_dimension_numbers<[1], [0], [0], [1], [0, 0, 1, 1], [], []>} : vector<128x128xbf16>, vector<128x128xbf16>, vector<128x128xf32> -> vector<128x128xf32>
    %21 = vector.broadcast %19 : vector<1x128xf32> to vector<128x128xf32>
    %22 = arith.addf %20, %21 : vector<128x128xf32>
    %cst_13 = arith.constant 0.000000e+00 : f32
    %23 = vector.broadcast %cst_13 : f32 to vector<128x128xf32>
    %24 = arith.maximumf %22, %23 : vector<128x128xf32>
    %25 = arith.truncf %24 : vector<128x128xf32> to vector<128x128xbf16>
    %c384 = arith.constant 384 : index
    %c0_14 = arith.constant 0 : index
    %26 = vector.load %arg2[%c384, %c0_14] : memref<1280x256xbf16, #tpu.memory_space<vmem>>, vector<128x256xbf16>
    %c3 = arith.constant 3 : index
    %c0_15 = arith.constant 0 : index
    %27 = vector.load %arg3[%c3, %c0_15] : memref<8x256xf32, #tpu.memory_space<vmem>>, vector<1x256xf32>
    %cst_16 = arith.constant dense<0.000000e+00> : vector<128x256xf32>
    %28 = tpu.matmul %25, %26, %cst_16 {dimension_numbers = #tpu.dot_dimension_numbers<[1], [0], [0], [1], [0, 0, 1, 1], [], []>} : vector<128x128xbf16>, vector<128x256xbf16>, vector<128x256xf32> -> vector<128x256xf32>
    %29 = vector.broadcast %27 : vector<1x256xf32> to vector<128x256xf32>
    %30 = arith.addf %28, %29 : vector<128x256xf32>
    %31 = vector.extract_strided_slice %30 {offsets = [0, 0], sizes = [128, 128], strides = [1, 1]} : vector<128x256xf32> to vector<128x128xf32>
    %cst_17 = arith.constant dense<0xFF800000> : vector<128xf32>
    %32 = vector.multi_reduction <maximumf>, %31, %cst_17 [1] : vector<128x128xf32> to vector<128xf32>
    %33 = vector.shape_cast %32 : vector<128xf32> to vector<128x1xf32>
    %34 = vector.broadcast %33 : vector<128x1xf32> to vector<128x128xf32>
    %35 = arith.subf %31, %34 : vector<128x128xf32>
    %36 = math.exp %35 : vector<128x128xf32>
    %cst_18 = arith.constant dense<0.000000e+00> : vector<128xf32>
    %37 = vector.multi_reduction <add>, %36, %cst_18 [1] : vector<128x128xf32> to vector<128xf32>
    %38 = vector.shape_cast %37 : vector<128xf32> to vector<128x1xf32>
    %39 = tpu.reciprocal %38 {approx = true} : vector<128x1xf32> -> vector<128x1xf32>
    %40 = vector.broadcast %39 : vector<128x1xf32> to vector<128x128xf32>
    %41 = arith.mulf %36, %40 : vector<128x128xf32>
    %42 = vector.extract_strided_slice %30 {offsets = [0, 128], sizes = [128, 128], strides = [1, 1]} : vector<128x256xf32> to vector<128x128xf32>
    %cst_19 = arith.constant dense<0xFF800000> : vector<128xf32>
    %43 = vector.multi_reduction <maximumf>, %42, %cst_19 [1] : vector<128x128xf32> to vector<128xf32>
    %44 = vector.shape_cast %43 : vector<128xf32> to vector<128x1xf32>
    %45 = vector.broadcast %44 : vector<128x1xf32> to vector<128x128xf32>
    %46 = arith.subf %42, %45 : vector<128x128xf32>
    %47 = math.exp %46 : vector<128x128xf32>
    %cst_20 = arith.constant dense<0.000000e+00> : vector<128xf32>
    %48 = vector.multi_reduction <add>, %47, %cst_20 [1] : vector<128x128xf32> to vector<128xf32>
    %49 = vector.shape_cast %48 : vector<128xf32> to vector<128x1xf32>
    %50 = tpu.reciprocal %49 {approx = true} : vector<128x1xf32> -> vector<128x1xf32>
    %51 = vector.broadcast %50 : vector<128x1xf32> to vector<128x128xf32>
    %52 = arith.mulf %47, %51 : vector<128x128xf32>
    %53 = arith.mulf %41, %0 : vector<128x128xf32>
    %54 = arith.truncf %53 : vector<128x128xf32> to vector<128x128xbf16>
    %c512 = arith.constant 512 : index
    %c0_21 = arith.constant 0 : index
    %55 = vector.load %arg2[%c512, %c0_21] : memref<1280x256xbf16, #tpu.memory_space<vmem>>, vector<128x256xbf16>
    %c4 = arith.constant 4 : index
    %c0_22 = arith.constant 0 : index
    %56 = vector.load %arg3[%c4, %c0_22] : memref<8x256xf32, #tpu.memory_space<vmem>>, vector<1x256xf32>
    %cst_23 = arith.constant dense<0.000000e+00> : vector<128x256xf32>
    %57 = tpu.matmul %54, %55, %cst_23 {dimension_numbers = #tpu.dot_dimension_numbers<[1], [0], [0], [1], [0, 0, 1, 1], [], []>} : vector<128x128xbf16>, vector<128x256xbf16>, vector<128x256xf32> -> vector<128x256xf32>
    %58 = vector.broadcast %56 : vector<1x256xf32> to vector<128x256xf32>
    %59 = arith.addf %57, %58 : vector<128x256xf32>
    %cst_24 = arith.constant 0.000000e+00 : f32
    %60 = vector.broadcast %cst_24 : f32 to vector<128x256xf32>
    %61 = arith.maximumf %59, %60 : vector<128x256xf32>
    %62 = arith.truncf %61 : vector<128x256xf32> to vector<128x256xbf16>
    %c640 = arith.constant 640 : index
    %c0_25 = arith.constant 0 : index
    %63 = vector.load %arg2[%c640, %c0_25] : memref<1280x256xbf16, #tpu.memory_space<vmem>>, vector<256x256xbf16>
    %c5 = arith.constant 5 : index
    %c0_26 = arith.constant 0 : index
    %64 = vector.load %arg3[%c5, %c0_26] : memref<8x256xf32, #tpu.memory_space<vmem>>, vector<1x256xf32>
    %cst_27 = arith.constant dense<0.000000e+00> : vector<128x256xf32>
    %65 = tpu.matmul %62, %63, %cst_27 {dimension_numbers = #tpu.dot_dimension_numbers<[1], [0], [0], [1], [0, 0, 1, 1], [], []>} : vector<128x256xbf16>, vector<256x256xbf16>, vector<128x256xf32> -> vector<128x256xf32>
    %66 = vector.broadcast %64 : vector<1x256xf32> to vector<128x256xf32>
    %67 = arith.addf %65, %66 : vector<128x256xf32>
    %cst_28 = arith.constant 0.000000e+00 : f32
    %68 = vector.broadcast %cst_28 : f32 to vector<128x256xf32>
    %69 = arith.maximumf %67, %68 : vector<128x256xf32>
    %70 = arith.truncf %69 : vector<128x256xf32> to vector<128x256xbf16>
    %c896 = arith.constant 896 : index
    %c0_29 = arith.constant 0 : index
    %71 = vector.load %arg2[%c896, %c0_29] : memref<1280x256xbf16, #tpu.memory_space<vmem>>, vector<256x128xbf16>
    %c6 = arith.constant 6 : index
    %c0_30 = arith.constant 0 : index
    %72 = vector.load %arg3[%c6, %c0_30] : memref<8x256xf32, #tpu.memory_space<vmem>>, vector<1x128xf32>
    %cst_31 = arith.constant dense<0.000000e+00> : vector<128x128xf32>
    %73 = tpu.matmul %70, %71, %cst_31 {dimension_numbers = #tpu.dot_dimension_numbers<[1], [0], [0], [1], [0, 0, 1, 1], [], []>} : vector<128x256xbf16>, vector<256x128xbf16>, vector<128x128xf32> -> vector<128x128xf32>
    %74 = vector.broadcast %72 : vector<1x128xf32> to vector<128x128xf32>
    %75 = arith.addf %73, %74 : vector<128x128xf32>
    %cst_32 = arith.constant 0.000000e+00 : f32
    %76 = vector.broadcast %cst_32 : f32 to vector<128x128xf32>
    %77 = arith.maximumf %75, %76 : vector<128x128xf32>
    %78 = arith.truncf %77 : vector<128x128xf32> to vector<128x128xbf16>
    %c1152 = arith.constant 1152 : index
    %c0_33 = arith.constant 0 : index
    %79 = vector.load %arg2[%c1152, %c0_33] : memref<1280x256xbf16, #tpu.memory_space<vmem>>, vector<128x128xbf16>
    %c7 = arith.constant 7 : index
    %c0_34 = arith.constant 0 : index
    %80 = vector.load %arg3[%c7, %c0_34] : memref<8x256xf32, #tpu.memory_space<vmem>>, vector<1x128xf32>
    %cst_35 = arith.constant dense<0.000000e+00> : vector<128x128xf32>
    %81 = tpu.matmul %78, %79, %cst_35 {dimension_numbers = #tpu.dot_dimension_numbers<[1], [0], [0], [1], [0, 0, 1, 1], [], []>} : vector<128x128xbf16>, vector<128x128xbf16>, vector<128x128xf32> -> vector<128x128xf32>
    %82 = vector.broadcast %80 : vector<1x128xf32> to vector<128x128xf32>
    %83 = arith.addf %81, %82 : vector<128x128xf32>
    %84 = math.tanh %83 : vector<128x128xf32>
    %85 = arith.mulf %52, %84 : vector<128x128xf32>
    %c0_36 = arith.constant 0 : index
    %c0_37 = arith.constant 0 : index
    %86 = vector.load %arg4[%c0_36, %c0_37] : memref<128x128xf32, #tpu.memory_space<vmem>>, vector<128x128xf32>
    tpu.vector_store %arg4[%c0_36, %c0_37], %85 {strides = array<i32>} : memref<128x128xf32, #tpu.memory_space<vmem>>, vector<128x128xf32>,
    return
  }
  func.func @transform_0(%arg0: i32) -> (i32, i32) {
    %c0_i32 = arith.constant 0 : i32
    %c0_i32_0 = arith.constant 0 : i32
    return %arg0, %c0_i32 : i32, i32
  }
  func.func @transform_1(%arg0: i32) -> (i32, i32) {
    %c0_i32 = arith.constant 0 : i32
    %c0_i32_0 = arith.constant 0 : i32
    %c0_i32_1 = arith.constant 0 : i32
    return %c0_i32, %c0_i32_0 : i32, i32
  }
  func.func @transform_2(%arg0: i32) -> (i32, i32) {
    %c0_i32 = arith.constant 0 : i32
    %c0_i32_0 = arith.constant 0 : i32
    %c0_i32_1 = arith.constant 0 : i32
    return %c0_i32, %c0_i32_0 : i32, i32
  }
  func.func @transform_3(%arg0: i32) -> (i32, i32) {
    %c0_i32 = arith.constant 0 : i32
    %c0_i32_0 = arith.constant 0 : i32
    return %arg0, %c0_i32 : i32, i32
  }
}

</mosaic_0001>

<bundles_post_ra>
// kernel: tpu_custom_call.1
= control target key start
LH: loop header
LB: loop body
LE: loop exit
PB: predicated region body
PF: predicated region fallthrough
CT: control target
= control target key end

     0   :  { %8 = vsyncpa [#allocation3], 0  ;;  %s4188_s0 = inlined_call_operand.hbm [shape: f32[512,128], index: 0, kind: input, shape index: {}]   ;;  %s4189_s1 = inlined_call_operand.hbm [shape: bf16[1280,256], index: 1, kind: input, shape index: {}]   ;;  %s4190_s2 = inlined_call_operand.hbm [shape: f32[8,256], index: 2, kind: input, shape index: {}]   ;;  %s4191_s3 = inlined_call_operand.hbm [shape: f32[512,128], index: 3, kind: output, shape index: {}]  }
   0x1   :  { %10 = vsyncpa [#allocation3 + $0x1], 0 }
   0x2   :  { %11 = vsyncpa [#allocation6], 0 }
   0x3   :  { %12 = vsyncpa [#allocation4], 0 }
   0x4   :  { %14 = vsyncpa [#allocation4 + $0x1], 0  ;;  %s3496_s12 = smov 0   ;;  %s3498_s13 = smov 0  }
   0x5   :  { %s3500_s14 = smov 0   ;;  %s3502_s15 = smov 0  }
   0x6 LB: > { %s3517_s16 = sadd.s32 4294967295, %s3465_s15   ;;  %s2537_s17 = sadd.s32 4294967294, %s3465_s15   ;;  %s3465_s15 = sphi %s3502_s15, %s4211_s15   ;;  %s3461_s14 = sphi %s3500_s14, %s4210_s14   ;;  %s3457_s13 = sphi %s3498_s13, %s4209_s13   ;;  %s3453_s12 = sphi %s3496_s12, %s4208_s12  }
   0x7   : > { %p40_p0 = scmp.ne.s32.totalorder %s3457_s13, %s3453_s12  ;;  %p4192_p1 = scmp.eq.s32.totalorder %s3517_s16, 0 }
   0x8   : > { %p106_p2 = scmp.eq.s32.totalorder %s3517_s16, 3  ;;  %p112_p3 = scmp.eq.s32.totalorder %s2537_s17, 3 }
   0x9   : > { %p3526_p4 = por %p4192_p1, %p40_p0  ;;  %p2538_p5 = scmp.ge.s32.totalorder %s3465_s15, 1 }
   0xa   : > { %p3531_p6 = por %p112_p3, %p40_p0  ;;  %p119_p7 = scmp.lt.s32.totalorder %s3465_s15, 5 }
   0xb   : > { %s4196_s18 = scalar_select %p3526_p4, 1, 0 }
   0xc   : > { %s4197_s19 = scalar_select %p3531_p6, 1, 0 }
   0xd   : > { %p3536_p8 = pnand %p2538_p5, %p119_p7  ;;  %s3467_s21 = smov [#allocation5]  }
   0xe   : > { %s131_s22 = sshll.u32 %s3467_s21, 4  ;;  %s3468_s24 = smov [#allocation7]   ;;  %s132_s22 = int_to_ptr.vmem [resolvable:$true] %s131_s22 }
   0xf   : > { %s4198_s20 = scalar_select %p3536_p8, 1, 0 }
  0x10   : > { %p2937_p9 = pneg %p3536_p8  ;;  %s145_s25 = sshll.u32 %s3468_s24, 4  ;;  %s146_s25 = int_to_ptr.vmem [resolvable:$true] %s145_s25 }
  0x11   : > { %s3328_s26 = scalar_lea.vmem %s132_s22, 20480  ;;  %p3336_p3 = scmp.lt.s32.totalorder %s132_s22, %s132_s22 }
  0x12   : > { %p3544_p10 = pnand %p2937_p9, %p4192_p1  ;;  %p3329_p12 = scmp.ne.s32.totalorder %s132_s22, %s3328_s26 }
  0x13   : > { %p3337_p5 = scmp.lt.s32.totalorder %s3328_s26, %s3328_s26 }
  0x14   : > { %p3319_p11 = pneg %p3544_p10 }
  0x15   : > { %p3338_p7 = por %p3337_p5, %p3336_p3 }
  0x16   : > { %p3331_p13 = pnand %p3329_p12, %p3319_p11 }
  0x18   : > { %p3332_p0 = pneg %p3331_p13 }
  0x1a   : > { %p3339_p9 = pnand %p3338_p7, %p3332_p0 }
  0x1c   : > { %3342 = shalt.err (!%p3339_p9)
}
  0x1d   : > { %s3469_s27 = smov 128   ;;  %s3470_s28 = smov 8  }
  0x1e   : > { %2940 = dma.hbm_to_vmem [thread:$0]  (!%p3544_p10), %s4189_s1, 20480, %s132_s22, [#allocation6], %s3469_s27, %s3469_s27, %s3470_s28  }
  0x1f   : > { %s3354_s4 = scalar_lea.vmem %s146_s25, 256  ;;  %p3362_p0 = scmp.lt.s32.totalorder %s146_s25, %s146_s25 }
  0x20   : > { %p3355_p12 = scmp.ne.s32.totalorder %s146_s25, %s3354_s4  ;;  %p3363_p5 = scmp.lt.s32.totalorder %s3354_s4, %s3354_s4 }
  0x22   : > { %p3357_p13 = pnand %p3355_p12, %p3319_p11  ;;  %p3364_p7 = por %p3363_p5, %p3362_p0 }
  0x24   : > { %p3358_p3 = pneg %p3357_p13 }
  0x26   : > { %p3365_p9 = pnand %p3364_p7, %p3358_p3 }
  0x28   : > { %3368 = shalt.err (!%p3365_p9)
}
  0x29   : > { %2943 = dma.hbm_to_vmem [thread:$0]  (!%p3544_p10), %s4190_s2, 256, %s146_s25, [#allocation6]  }
  0x2a   : > { %s3570_s7 = sadd.s32 1, %s3465_s15   ;;  %s27_s8 = sadd.s32 1, %s3461_s14 }
  0x2b   : > { %s24_s9 = ssub.s32 %s3465_s15, %s3570_s7  ;;  %p34_p11 = scmp.ne.s32.totalorder %s3461_s14, %s3457_s13 }
  0x2c   : > { %p25_p12 = scmp.eq.s32.totalorder %s24_s9, 0  ;;  %p35_p13 = scmp.eq.s32.totalorder %s3465_s15, 0 }
  0x2d   : > { %p3580_p3 = por %p106_p2, %p34_p11  ;;  %p2954_p0 = scmp.lt.s32.totalorder %s3465_s15, 4 }
  0x2e   : > { %s3586_s11 = scalar_select %p25_p12, %s3461_s14, %s27_s8  }
  0x2f   : > { %s4200_s10 = scalar_select %p3580_p3, 1, 0 }
  0x30   : > { %p36_p5 = por %p35_p13, %p34_p11  ;;  %s156_s17 = sand.u32 1, %s3461_s14  }
  0x31   : > { %s2542_s21 = sshll.u32 %s156_s17, 7  ;;  %s2667_s22 = sshll.u32 %s3465_s15, 11 }
  0x32   : > { %s3593_s25 = scalar_lea.hbm %s4188_s0, %s2667_s22  ;;  %s160_s26 = scalar_lea.vmem [#allocation2], %s2542_s21 }
  0x33   : > { %s167_s29 = sshll.u32 %s160_s26, 4  ;;  %p3597_p2 = pnand %p2954_p0, %p36_p5  ;;  %s3595_s29 = int_to_ptr.vmem [resolvable:$true] %s167_s29 }
  0x34   : > { %s3601_s4 = scalar_lea.sflag [#allocation3], %s156_s17  ;;  %s3369_s5 = scalar_lea.hbm %s3593_s25, 2048 }
  0x35   : > { %p3370_p10 = scmp.ne.s32.totalorder %s3593_s25, %s3369_s5  ;;  %p3371_p7 = pneg %p3597_p2 }
  0x36   : > { %s3374_s9 = scalar_lea.hbm %s4188_s0, 8192  ;;  %p3375_p12 = scmp.lt.s32.totalorder %s3593_s25, %s4188_s0 }
  0x37   : > { %p3372_p9 = pnand %p3371_p7, %p3370_p10  ;;  %p3376_p13 = scmp.lt.s32.totalorder %s3374_s9, %s3369_s5 }
  0x39   : > { %p3373_p11 = pneg %p3372_p9  ;;  %p3377_p0 = por %p3376_p13, %p3375_p12 }
  0x3b   : > { %p3378_p5 = pnand %p3377_p0, %p3373_p11 }
  0x3d   : > { %3381 = shalt.err (!%p3378_p5)
}
  0x3e   : > { %s3382_s17 = scalar_lea.vmem %s3595_s29, 2048  ;;  %s3471_s23 = smov [#allocation2]  }
  0x3f   : > { %p3383_p1 = scmp.ne.s32.totalorder %s3595_s29, %s3382_s17  ;;  %s3387_s24 = sshll.u32 %s3471_s23, 4  ;;  %s3388_s24 = int_to_ptr.vmem [resolvable:$false] %s3387_s24 }
  0x40   : > { %s3389_s26 = scalar_lea.vmem %s3388_s24, 4096  ;;  %p3390_p9 = scmp.lt.s32.totalorder %s3595_s29, %s3388_s24 }
  0x41   : > { %p3385_p6 = pnand %p3383_p1, %p3371_p7  ;;  %p3391_p3 = scmp.lt.s32.totalorder %s3389_s26, %s3382_s17 }
  0x43   : > { %p3386_p10 = pneg %p3385_p6  ;;  %p3392_p4 = por %p3391_p3, %p3390_p9 }
  0x45   : > { %p3393_p8 = pnand %p3392_p4, %p3386_p10 }
  0x47   : > { %3396 = shalt.err (!%p3393_p8)
}
  0x48   : > { %2947 = dma.hbm_to_vmem [thread:$0]  (!%p3597_p2), %s3593_s25, 2048, %s3595_s29, %s3601_s4, %s3469_s27, %s3469_s27, %s3470_s28  }
  0x49   : > { %p4202_p1 = scmp.ne.s32.totalorder %s4198_s20, 0 }
  0x4a   : > { %s3628_s5 = sand.u32 (!%p4202_p1), 1, %s3457_s13   ;;  %p4203_p4 = scmp.ne.s32.totalorder (!%p4202_p1), %s4196_s18, 0 }
  0x4b   : > { %179 = sbr.rel (%p4202_p1) target bundleno = 2153 (0x869), region = 32  ;;  %s2546_s6 = sshll.u32 (!%p4202_p1), %s3628_s5, 7 }
  0x4c   : > { %s182_s8 = scalar_lea.sflag (!%p4202_p1), [#allocation3], %s3628_s5  ;;  %s3634_s30 = scalar_lea.vmem (!%p4202_p1), [#allocation2], %s2546_s6 }
  0x50   : > { %3440 = dma.done.wait (%p4203_p4), %s182_s8, 2048  }
  0x51   : > { %3442 = vsyncadd (%p4203_p4), %s182_s8, 4294965248  ;;  %p4204_p6 = scmp.eq.s32.totalorder %s3517_s16, 0 }
  0x53   : > { %3444 = dma.done.wait (%p4204_p6), [#allocation6], 20736   ;;  %p4205_p8 = pmov %p4204_p6 }
  0x54   : > { %v2997_v0 = vld [vmem:[#allocation5 + $0x70] ss:$8 sps:$4 sm:$0xff]   ;;  %v2998_v1 = vld [vmem:[#allocation5 + $0x60] ss:$8 sps:$4 sm:$0xff]   ;;  %s4097_s18 = scalar_lea.vmem [#allocation8], %s2546_s6  ;;  %s2668_s20 = sshll.u32 %s3517_s16, 11 }
  0x55   : > { %3446 = vsyncadd (%p4205_p8), [#allocation6], 4294946560  ;;  %2797 = vmatprep.subr.bf16.mxu0 %v2997_v0  ;;  %v2999_v2 = vld [vmem:[#allocation5 + $0x50] ss:$8 sps:$4 sm:$0xff]   ;;  %v3000_v3 = vld [vmem:[#allocation5 + $0x40] ss:$8 sps:$4 sm:$0xff]   ;;  %s4142_s29 = scalar_lea.hbm %s4191_s3, %s2668_s20 }
  0x56   : > { %2798 = vmatpush3.bf16.msra.mxu0 %v2997_v0  ;;  %v219_v4 = vld [vmem:[%s3634_s30] sm:$0xff]  ;;  %v220_v5 = vld [vmem:[%s3634_s30 + $0x8] sm:$0xff]  ;;  %v3001_v7 = vld [vmem:[#allocation5 + $0x30] ss:$8 sps:$4 sm:$0xff]   ;;  %s2445_s27 = sshll.u32 %s4097_s18, 4  ;;  %s2432_s16 = scalar_lea.sflag [#allocation4], %s3628_s5  ;;  %s4144_s27 = int_to_ptr.vmem [resolvable:$true] %s2445_s27 }
  0x57   : > { %2799 = vmatprep.subr.bf16.mxu0 %v2998_v1  ;;  %v235_v6 = vpack.c.bf16 %v220_v5, %v219_v4  ;;  %v3005_v8 = vld [vmem:[#allocation5 + $0xf0] ss:$8 sps:$4 sm:$0xff]   ;;  %v3006_v9 = vld [vmem:[#allocation5 + $0xe0] ss:$8 sps:$4 sm:$0xff]   ;;  %s3397_s4 = scalar_lea.vmem %s4144_s27, 2048  ;;  %p4206_p2 = scmp.ne.s32.totalorder %s4200_s10, 0 }
  0x58   : > { %v3002_v10 = vld [vmem:[#allocation5 + $0x20] ss:$8 sps:$4 sm:$0xff]   ;;  %2829 = vmatprep.subr.bf16.mxu1 %v3005_v8  ;;  %v3003_v11 = vld [vmem:[#allocation5 + $0x10] ss:$8 sps:$4 sm:$0xff]   ;;  %p3398_p3 = scmp.ne.s32.totalorder %s4144_s27, %s3397_s4  ;;  %s3473_s9 = smov [#allocation8]  }
  0x59   : > { %2813 = vmatprep.mubr.bf16.mxu0 %v235_v6  ;;  %2830 = vmatpush3.bf16.msra.mxu1 %v3005_v8  ;;  %v3007_v12 = vld [vmem:[#allocation5 + $0xd0] ss:$8 sps:$4 sm:$0xff]   ;;  %v3008_v13 = vld [vmem:[#allocation5 + $0xc0] ss:$8 sps:$4 sm:$0xff]   ;;  %s3401_s21 = sshll.u32 %s3473_s9, 4  ;;  %s3402_s21 = int_to_ptr.vmem [resolvable:$false] %s3401_s21 }
  0x5a   : > { %2800 = vmatpush3.bf16.msra.mxu0 %v2998_v1  ;;  %2831 = vmatprep.subr.bf16.mxu1 %v3006_v9  ;;  %v3004_v14 = vld [vmem:[#allocation5] ss:$8 sps:$4 sm:$0xff]   ;;  %v3009_v15 = vld [vmem:[#allocation5 + $0xb0] ss:$8 sps:$4 sm:$0xff]   ;;  %p3399_p7 = pnand %p3398_p3, %p4206_p2  ;;  %s3403_s22 = scalar_lea.vmem %s3402_s21, 4096 }
  0x5b   : > { %2801 = vmatprep.subr.bf16.mxu0 %v2999_v2  ;;  %v221_v16 = vld [vmem:[%s3634_s30 + $0x10] sm:$0xff]  ;;  %v222_v17 = vld [vmem:[%s3634_s30 + $0x18] sm:$0xff]  ;;  %v223_v18 = vld [vmem:[%s3634_s30 + $0x20] sm:$0xff]  ;;  %p3404_p12 = scmp.lt.s32.totalorder %s4144_s27, %s3402_s21  ;;  %p3405_p13 = scmp.lt.s32.totalorder %s3403_s22, %s3397_s4 }
  0x5c   : > { %v224_v19 = vld [vmem:[%s3634_s30 + $0x28] sm:$0xff]  ;;  %v236_v20 = vpack.c.bf16 %v222_v17, %v221_v16  ;;  %v225_v22 = vld [vmem:[%s3634_s30 + $0x30] sm:$0xff]  ;;  %v226_v23 = vld [vmem:[%s3634_s30 + $0x38] sm:$0xff]  ;;  %p3400_p11 = pneg %p3399_p7 }
  0x5d   : > { %2832 = vmatpush3.bf16.msra.mxu1 %v3006_v9  ;;  %v237_v21 = vpack.c.bf16 %v224_v19, %v223_v18  ;;  %v227_v24 = vld [vmem:[%s3634_s30 + $0x40] sm:$0xff]  ;;  %v228_v25 = vld [vmem:[%s3634_s30 + $0x48] sm:$0xff]  ;;  %v238_v26 = vpack.c.bf16 %v226_v23, %v225_v22  ;;  %v229_v28 = vld [vmem:[%s3634_s30 + $0x50] sm:$0xff]  ;;  %p3406_p0 = por %p3405_p13, %p3404_p12 }
  0x5e   : > { %2802 = vmatpush3.bf16.msra.mxu0 %v2999_v2  ;;  %2833 = vmatprep.subr.bf16.mxu1 %v3007_v12  ;;  %v239_v27 = vpack.c.bf16 %v228_v25, %v227_v24  ;;  %v230_v29 = vld [vmem:[%s3634_s30 + $0x58] sm:$0xff]  ;;  %v231_v30 = vld [vmem:[%s3634_s30 + $0x60] sm:$0xff]  ;;  %v232_v31 = vld [vmem:[%s3634_s30 + $0x68] sm:$0xff] }
  0x5f   : > { %2803 = vmatprep.subr.bf16.mxu0 %v3000_v3  ;;  %v240_v32 = vpack.c.bf16 %v230_v29, %v229_v28  ;;  %v241_v33 = vpack.c.bf16 %v232_v31, %v231_v30  ;;  %v233_v34 = vld [vmem:[%s3634_s30 + $0x70] sm:$0xff]  ;;  %v234_v35 = vld [vmem:[%s3634_s30 + $0x78] sm:$0xff]  ;;  %v3010_v37 = vld [vmem:[#allocation5 + $0xa0] ss:$8 sps:$4 sm:$0xff]   ;;  %p3407_p5 = pnand %p3406_p0, %p3400_p11 }
  0x60   : > { %v242_v36 = vpack.c.bf16 %v234_v35, %v233_v34  ;;  %v3011_v38 = vld [vmem:[#allocation5 + $0x90] ss:$8 sps:$4 sm:$0xff]   ;;  %v3012_v39 = vld [vmem:[#allocation5 + $0x80] ss:$8 sps:$4 sm:$0xff]  }
  0x61   : > { %2834 = vmatpush3.bf16.msra.mxu1 %v3007_v12  ;;  %v3013_v40 = vld [vmem:[#allocation5 + $0x170] ss:$8 sps:$4 sm:$0xff]   ;;  %v3014_v41 = vld [vmem:[#allocation5 + $0x160] ss:$8 sps:$4 sm:$0xff]  }
  0x62   : > { %2804 = vmatpush3.bf16.msra.mxu0 %v3000_v3  ;;  %2835 = vmatprep.subr.bf16.mxu1 %v3008_v13  ;;  %v3015_v42 = vld [vmem:[#allocation5 + $0x150] ss:$8 sps:$4 sm:$0xff]   ;;  %v3016_v43 = vld [vmem:[#allocation5 + $0x140] ss:$8 sps:$4 sm:$0xff]  }
  0x63   : > { %2805 = vmatprep.subr.bf16.mxu0 %v3001_v7  ;;  %v3017_v44 = vld [vmem:[#allocation5 + $0x130] ss:$8 sps:$4 sm:$0xff]   ;;  %v259_v47 = vld [vmem:[#allocation7] ss:$0 sm:$0xff] }
  0x65   : > { %2836 = vmatpush3.bf16.msra.mxu1 %v3008_v13 }
  0x66   : > { %2806 = vmatpush3.bf16.msra.mxu0 %v3001_v7  ;;  %2837 = vmatprep.subr.bf16.mxu1 %v3009_v15 }
  0x67   : > { %2807 = vmatprep.subr.bf16.mxu0 %v3002_v10 }
  0x69   : > { %2838 = vmatpush3.bf16.msra.mxu1 %v3009_v15 }
  0x6a   : > { %2808 = vmatpush3.bf16.msra.mxu0 %v3002_v10  ;;  %2839 = vmatprep.subr.bf16.mxu1 %v3010_v37 }
  0x6b   : > { %2809 = vmatprep.subr.bf16.mxu0 %v3003_v11 }
  0x6d   : > { %2840 = vmatpush3.bf16.msra.mxu1 %v3010_v37 }
  0x6e   : > { %2810 = vmatpush3.bf16.msra.mxu0 %v3003_v11  ;;  %2841 = vmatprep.subr.bf16.mxu1 %v3011_v38 }
  0x6f   : > { %2811 = vmatprep.subr.bf16.mxu0 %v3004_v14 }
  0x71   : > { %2842 = vmatpush3.bf16.msra.mxu1 %v3011_v38  ;;  %v3018_v38 = vld [vmem:[#allocation5 + $0x120] ss:$8 sps:$4 sm:$0xff]  }
  0x72   : > { %2812 = vmatpush3.bf16.msra.mxu0 %v3004_v14  ;;  %2843 = vmatprep.subr.bf16.mxu1 %v3012_v39 }
  0x73   : > { %2861 = vmatprep.subr.bf16.mxu0 %v3013_v40 }
  0x75   : > { %2814 = vmatmul.mubr.bf16.vlgmr.msra.gmra.mxu0 %v236_v20  ;;  %2844 = vmatpush3.bf16.msra.mxu1 %v3012_v39  ;;  %v3019_v39 = vld [vmem:[#allocation5 + $0x110] ss:$8 sps:$4 sm:$0xff]  }
  0x76   : > { %2817 = vmatprep.mubr.bf16.mxu0 %v237_v21  ;;  %2862 = vmatpush3.bf16.msra.mxu0 %v3013_v40  ;;  %v3020_v40 = vld [vmem:[#allocation5 + $0x100] ss:$8 sps:$4 sm:$0xff]  }
  0x77   : > { %2863 = vmatprep.subr.bf16.mxu0 %v3014_v41 }
  0x7a   : > { %2864 = vmatpush3.bf16.msra.mxu0 %v3014_v41  ;;  %v3021_v41 = vld [vmem:[#allocation5 + $0x1f0] ss:$8 sps:$4 sm:$0xff]  }
  0x7b   : > { %2865 = vmatprep.subr.bf16.mxu0 %v3015_v42 }
  0x7d   : > { %2818 = vmatmul.mubr.bf16.gmra.mxu0 %v238_v26 }
  0x7e   : > { %2821 = vmatprep.mubr.bf16.mxu0 %v239_v27  ;;  %2866 = vmatpush3.bf16.msra.mxu0 %v3015_v42  ;;  %v3023_v42 = vld [vmem:[#allocation5 + $0x1f4] ss:$8 sps:$4 sm:$0xff]  }
  0x7f   : > { %2867 = vmatprep.subr.bf16.mxu0 %v3016_v43  ;;  %910 = vmatprep.subr.bf16.mxu1 %v3023_v42 }
  0x82   : > { %2868 = vmatpush3.bf16.msra.mxu0 %v3016_v43  ;;  %v3026_v43 = vld [vmem:[#allocation5 + $0x1e4] ss:$8 sps:$4 sm:$0xff]  }
  0x83   : > { %2869 = vmatprep.subr.bf16.mxu0 %v3017_v44 }
  0x85   : > { %2822 = vmatmul.mubr.bf16.gmra.mxu0 %v240_v32 }
  0x86   : > { %2825 = vmatprep.mubr.bf16.mxu0 %v241_v33  ;;  %2870 = vmatpush3.bf16.msra.mxu0 %v3017_v44  ;;  %v3024_v44 = vld [vmem:[#allocation5 + $0x1e0] ss:$8 sps:$4 sm:$0xff]  }
  0x87   : > { %2871 = vmatprep.subr.bf16.mxu0 %v3018_v38 }
  0x8a   : > { %2872 = vmatpush3.bf16.msra.mxu0 %v3018_v38 }
  0x8b   : > { %2873 = vmatprep.subr.bf16.mxu0 %v3019_v39 }
  0x8d   : > { %2826 = vmatmul.mubr.bf16.gmra.mxu0 %v242_v36 }
  0x8e   : > { %2874 = vmatpush3.bf16.msra.mxu0 %v3019_v39 }
  0x8f   : > { %2875 = vmatprep.subr.bf16.mxu0 %v3020_v40 }
  0x92   : > { %2876 = vmatpush3.bf16.msra.mxu0 %v3020_v40 }
 0x135   : > { %v2815_v45 = vpop.f32.mrf.mxu0 }
 0x136   : > { %v351_v51 = vadd.f32 %v2815_v45, %v259_v47  ;;  %v3029_v45 = vld [vmem:[#allocation5 + $0x1d4] ss:$8 sps:$4 sm:$0xff]  }
 0x137   : > { %v342_v46 = vpop.f32.mrf.mxu0 }
 0x138   : > { %v343_v49 = vadd.f32 %v342_v46, %v259_v47  ;;  %v407_v58 = vmax.f32 %v351_v51, 0.0  ;;  %v3027_v46 = vld [vmem:[#allocation5 + $0x1d0] ss:$8 sps:$4 sm:$0xff]  }
 0x139   : > { %v2816_v48 = vpop.f32.mrf.mxu0 }
 0x13a   : > { %v354_v50 = vadd.f32 %v2816_v48, %v259_v47  ;;  %v405_v56 = vmax.f32 %v343_v49, 0.0  ;;  %v3030_v48 = vld [vmem:[#allocation5 + $0x1c0] ss:$8 sps:$4 sm:$0xff]   ;;  %v3035_v49 = vld [vmem:[#allocation5 + $0x1b4] ss:$8 sps:$4 sm:$0xff]  }
 0x13b   : > { %v345_v52 = vpop.f32.mrf.mxu0 }
 0x13c   : > { %v346_v53 = vadd.f32 %v345_v52, %v259_v47  ;;  %v408_v54 = vmax.f32 %v354_v50, 0.0  ;;  %v3033_v50 = vld [vmem:[#allocation5 + $0x1b0] ss:$8 sps:$4 sm:$0xff]  }
 0x13d   : > { %v2819_v55 = vpop.f32.mrf.mxu0 }
 0x13e   : > { %v406_v57 = vmax.f32 %v346_v53, 0.0  ;;  %v367_v59 = vadd.f32 %v2819_v55, %v259_v47  ;;  %v422_v63 = vpack.c.bf16 %v408_v54, %v407_v58  ;;  %v445_v53 = vld [vmem:[#allocation7 + $0x1] ss:$0 sm:$0xff] }
 0x13f   : > { %v358_v60 = vpop.f32.mrf.mxu0 }
 0x140   : > { %v359_v61 = vadd.f32 %v358_v60, %v259_v47  ;;  %v421_v62 = vpack.c.bf16 %v406_v57, %v405_v56  ;;  %v411_v2 = vmax.f32 %v367_v59, 0.0 }
 0x141   : > { %v2820_v0 = vpop.f32.mrf.mxu0 }
 0x142   : > { %v370_v1 = vadd.f32 %v2820_v0, %v259_v47  ;;  %2845 = vmatprep.mubr.bf16.mxu1 %v421_v62  ;;  %v409_v4 = vmax.f32 %v359_v61, 0.0 }
 0x143   : > { %v361_v3 = vpop.f32.mrf.mxu0  ;;  %2846 = vmatmul.mubr.bf16.vlgmr.msra.gmra.mxu1 %v422_v63 }
 0x144   : > { %v412_v5 = vmax.f32 %v370_v1, 0.0  ;;  %v362_v6 = vadd.f32 %v361_v3, %v259_v47  ;;  %911 = vmatpush1.bf16.msra.mxu1 %v3021_v41 }
 0x145   : > { %v2823_v7 = vpop.f32.mrf.mxu0  ;;  %912 = vmatprep.subr.bf16.mxu1 %v3026_v43 }
 0x146   : > { %v410_v8 = vmax.f32 %v362_v6, 0.0  ;;  %v424_v9 = vpack.c.bf16 %v412_v5, %v411_v2  ;;  %v383_v10 = vadd.f32 %v2823_v7, %v259_v47 }
 0x147   : > { %v374_v11 = vpop.f32.mrf.mxu0 }
 0x148   : > { %v423_v12 = vpack.c.bf16 %v410_v8, %v409_v4  ;;  %v375_v13 = vadd.f32 %v374_v11, %v259_v47  ;;  %v415_v16 = vmax.f32 %v383_v10, 0.0  ;;  %913 = vmatpush1.bf16.msra.mxu1 %v3024_v44  ;;  %v3038_v44 = vld [vmem:[#allocation5 + $0x1a4] ss:$8 sps:$4 sm:$0xff]  }
 0x149   : > { %v2824_v14 = vpop.f32.mrf.mxu0  ;;  %914 = vmatprep.subr.bf16.mxu1 %v3029_v45  ;;  %v3036_v45 = vld [vmem:[#allocation5 + $0x1a0] ss:$8 sps:$4 sm:$0xff]  }
 0x14a   : > { %v386_v15 = vadd.f32 %v2824_v14, %v259_v47  ;;  %2849 = vmatprep.mubr.bf16.mxu1 %v423_v12  ;;  %v413_v18 = vmax.f32 %v375_v13, 0.0 }
 0x14b   : > { %v377_v17 = vpop.f32.mrf.mxu0  ;;  %2850 = vmatmul.mubr.bf16.gmra.mxu1 %v424_v9 }
 0x14c   : > { %v416_v19 = vmax.f32 %v386_v15, 0.0  ;;  %v378_v20 = vadd.f32 %v377_v17, %v259_v47  ;;  %915 = vmatpush1.bf16.msra.mxu1 %v3027_v46  ;;  %v3041_v46 = vld [vmem:[#allocation5 + $0x194] ss:$8 sps:$4 sm:$0xff]  }
 0x14d   : > { %v2827_v21 = vpop.f32.mrf.mxu0 }
 0x14e   : > { %v414_v22 = vmax.f32 %v378_v20, 0.0  ;;  %v426_v23 = vpack.c.bf16 %v416_v19, %v415_v16  ;;  %v399_v24 = vadd.f32 %v2827_v21, %v259_v47 }
 0x14f   : > { %v390_v25 = vpop.f32.mrf.mxu0 }
 0x150   : > { %v425_v26 = vpack.c.bf16 %v414_v22, %v413_v18  ;;  %v391_v27 = vadd.f32 %v390_v25, %v259_v47  ;;  %v419_v30 = vmax.f32 %v399_v24, 0.0 }
 0x151   : > { %v2828_v28 = vpop.f32.mrf.mxu0 }
 0x152   : > { %2853 = vmatprep.mubr.bf16.mxu1 %v425_v26  ;;  %v402_v29 = vadd.f32 %v2828_v28, %v259_v47  ;;  %v417_v32 = vmax.f32 %v391_v27, 0.0 }
 0x153   : > { %2854 = vmatmul.mubr.bf16.gmra.mxu1 %v426_v23  ;;  %v393_v31 = vpop.f32.mrf.mxu0 }
 0x154   : > { %v420_v33 = vmax.f32 %v402_v29, 0.0  ;;  %v394_v34 = vadd.f32 %v393_v31, %v259_v47  ;;  %v3032_v47 = vld [vmem:[#allocation5 + $0x1c4] ss:$8 sps:$4 sm:$0xff]  }
 0x155   : > { %916 = vmatprep.subr.bf16.mxu1 %v3032_v47  ;;  %v3039_v47 = vld [vmem:[#allocation5 + $0x190] ss:$8 sps:$4 sm:$0xff]  }
 0x156   : > { %v418_v35 = vmax.f32 %v394_v34, 0.0  ;;  %v428_v36 = vpack.c.bf16 %v420_v33, %v419_v30  ;;  %917 = vmatpush1.bf16.msra.mxu1 %v3030_v48  ;;  %v3044_v48 = vld [vmem:[#allocation5 + $0x184] ss:$8 sps:$4 sm:$0xff]  }
 0x157   : > { %918 = vmatprep.subr.bf16.mxu1 %v3035_v49  ;;  %v3042_v49 = vld [vmem:[#allocation5 + $0x180] ss:$8 sps:$4 sm:$0xff]  }
 0x158   : > { %v427_v37 = vpack.c.bf16 %v418_v35, %v417_v32 }
 0x15a   : > { %2857 = vmatprep.mubr.bf16.mxu1 %v427_v37  ;;  %919 = vmatpush1.bf16.msra.mxu1 %v3033_v50  ;;  %v3472_v50 = vmov 0  }
 0x15b   : > { %2858 = vmatmul.mubr.bf16.gmra.mxu1 %v428_v36  ;;  %920 = vmatprep.subr.bf16.mxu1 %v3038_v44  ;;  %v820_v44 = vlaneseq }
 0x15c   : > { %942 = vmatprep.mubr.bf16.mxu1 %v3472_v50 }
 0x15e   : > { %921 = vmatpush1.bf16.msra.mxu1 %v3036_v45  ;;  %v3669_v45 = vshrl.u32 %v820_v44, 7 }
 0x15f   : > { %922 = vmatprep.subr.bf16.mxu1 %v3041_v46 }
 0x160   : > { %v3672_v46 = vsub.s32 0, %v3669_v45 }
 0x162   : > { %923 = vmatpush1.bf16.msra.mxu1 %v3039_v47  ;;  %v3674_v47 = vld [vmem:[#allocation7 + $0x3] ss:$8 sm:$0x3] }
 0x163   : > { %924 = vmatprep.subr.bf16.mxu1 %v3044_v48  ;;  %v823_v48 = vrot.slane %v3674_v47, %v3672_v46 }
 0x166   : > { %925 = vmatpush1.bf16.msra.mxu1 %v3042_v49 }
 0x203   : > { %v2847_v51 = vpop.f32.mrf.mxu1 }
 0x204   : > { %v537_v57 = vadd.f32 %v2847_v51, %v445_v53 }
 0x205   : > { %v528_v52 = vpop.f32.mrf.mxu1 }
 0x206   : > { %v529_v55 = vadd.f32 %v528_v52, %v445_v53  ;;  %v593_v0 = vmax.f32 %v537_v57, 0.0 }
 0x207   : > { %v2848_v54 = vpop.f32.mrf.mxu1 }
 0x208   : > { %v540_v56 = vadd.f32 %v2848_v54, %v445_v53  ;;  %v591_v62 = vmax.f32 %v529_v55, 0.0 }
 0x209   : > { %v531_v58 = vpop.f32.mrf.mxu1 }
 0x20a   : > { %v532_v59 = vadd.f32 %v531_v58, %v445_v53  ;;  %v594_v60 = vmax.f32 %v540_v56, 0.0 }
 0x20b   : > { %v2851_v61 = vpop.f32.mrf.mxu1 }
 0x20c   : > { %v592_v63 = vmax.f32 %v532_v59, 0.0  ;;  %v608_v3 = vpack.c.bf16 %v594_v60, %v593_v0  ;;  %v553_v7 = vadd.f32 %v2851_v61, %v445_v53 }
 0x20d   : > { %v544_v1 = vpop.f32.mrf.mxu1 }
 0x20e   : > { %v607_v2 = vpack.c.bf16 %v592_v63, %v591_v62  ;;  %v545_v5 = vadd.f32 %v544_v1, %v445_v53  ;;  %v597_v14 = vmax.f32 %v553_v7, 0.0 }
 0x20f   : > { %v2852_v4 = vpop.f32.mrf.mxu1 }
 0x210   : > { %v556_v6 = vadd.f32 %v2852_v4, %v445_v53  ;;  %2877 = vmatprep.mubr.bf16.mxu0 %v607_v2  ;;  %v595_v12 = vmax.f32 %v545_v5, 0.0 }
 0x211   : > { %v547_v8 = vpop.f32.mrf.mxu1  ;;  %2878 = vmatmul.mubr.bf16.vlgmr.msra.gmra.mxu0 %v608_v3 }
 0x212   : > { %v548_v9 = vadd.f32 %v547_v8, %v445_v53  ;;  %v598_v10 = vmax.f32 %v556_v6, 0.0 }
 0x213   : > { %v2855_v11 = vpop.f32.mrf.mxu1 }
 0x214   : > { %v596_v13 = vmax.f32 %v548_v9, 0.0  ;;  %v569_v15 = vadd.f32 %v2855_v11, %v445_v53  ;;  %v610_v19 = vpack.c.bf16 %v598_v10, %v597_v14 }
 0x215   : > { %v560_v16 = vpop.f32.mrf.mxu1 }
 0x216   : > { %v609_v17 = vpack.c.bf16 %v596_v13, %v595_v12  ;;  %v561_v18 = vadd.f32 %v560_v16, %v445_v53  ;;  %v601_v22 = vmax.f32 %v569_v15, 0.0 }
 0x217   : > { %v2856_v20 = vpop.f32.mrf.mxu1 }
 0x218   : > { %v572_v21 = vadd.f32 %v2856_v20, %v445_v53  ;;  %2881 = vmatprep.mubr.bf16.mxu0 %v609_v17  ;;  %v599_v24 = vmax.f32 %v561_v18, 0.0 }
 0x219   : > { %v563_v23 = vpop.f32.mrf.mxu1  ;;  %2882 = vmatmul.mubr.bf16.gmra.mxu0 %v610_v19 }
 0x21a   : > { %v602_v25 = vmax.f32 %v572_v21, 0.0  ;;  %v564_v26 = vadd.f32 %v563_v23, %v445_v53 }
 0x21b   : > { %v2859_v27 = vpop.f32.mrf.mxu1 }
 0x21c   : > { %v600_v28 = vmax.f32 %v564_v26, 0.0  ;;  %v612_v29 = vpack.c.bf16 %v602_v25, %v601_v22  ;;  %v585_v30 = vadd.f32 %v2859_v27, %v445_v53 }
 0x21d   : > { %v576_v31 = vpop.f32.mrf.mxu1 }
 0x21e   : > { %v611_v32 = vpack.c.bf16 %v600_v28, %v599_v24  ;;  %v577_v33 = vadd.f32 %v576_v31, %v445_v53  ;;  %v605_v36 = vmax.f32 %v585_v30, 0.0 }
 0x21f   : > { %v2860_v34 = vpop.f32.mrf.mxu1 }
 0x220   : > { %2885 = vmatprep.mubr.bf16.mxu0 %v611_v32  ;;  %v588_v35 = vadd.f32 %v2860_v34, %v445_v53  ;;  %v603_v38 = vmax.f32 %v577_v33, 0.0 }
 0x221   : > { %2886 = vmatmul.mubr.bf16.gmra.mxu0 %v612_v29  ;;  %v579_v37 = vpop.f32.mrf.mxu1 }
 0x222   : > { %v606_v39 = vmax.f32 %v588_v35, 0.0  ;;  %v580_v40 = vadd.f32 %v579_v37, %v445_v53  ;;  %v631_v53 = vld [vmem:[#allocation7 + $0x2] ss:$0 sm:$0xff] }
 0x224   : > { %v604_v41 = vmax.f32 %v580_v40, 0.0  ;;  %v614_v42 = vpack.c.bf16 %v606_v39, %v605_v36 }
 0x226   : > { %v613_v43 = vpack.c.bf16 %v604_v41, %v603_v38 }
 0x228   : > { %2889 = vmatprep.mubr.bf16.mxu0 %v613_v43 }
 0x229   : > { %2890 = vmatmul.mubr.bf16.gmra.mxu0 %v614_v42 }
 0x22a   : > { %1476 = vmatprep.mubr.bf16.mxu0 %v3472_v50 }
 0x2d1   : > { %v2879_v51 = vpop.f32.mrf.mxu0 }
 0x2d2   : > { %v723_v1 = vadd.f32 %v2879_v51, %v631_v53 }
 0x2d3   : > { %v714_v52 = vpop.f32.mrf.mxu0 }
 0x2d4   : > { %v715_v55 = vadd.f32 %v714_v52, %v631_v53  ;;  %v779_v4 = vmax.f32 %v723_v1, 0.0 }
 0x2d5   : > { %v2880_v54 = vpop.f32.mrf.mxu0 }
 0x2d6   : > { %v777_v59 = vmax.f32 %v715_v55, 0.0  ;;  %v726_v62 = vadd.f32 %v2880_v54, %v631_v53 }
 0x2d7   : > { %v717_v56 = vpop.f32.mrf.mxu0 }
 0x2d8   : > { %v718_v57 = vadd.f32 %v717_v56, %v631_v53  ;;  %v780_v2 = vmax.f32 %v726_v62, 0.0 }
 0x2d9   : > { %v2883_v58 = vpop.f32.mrf.mxu0 }
 0x2da   : > { %v778_v60 = vmax.f32 %v718_v57, 0.0  ;;  %v794_v5 = vpack.c.bf16 %v780_v2, %v779_v4  ;;  %v739_v15 = vadd.f32 %v2883_v58, %v631_v53 }
 0x2db   : > { %v730_v61 = vpop.f32.mrf.mxu0 }
 0x2dc   : > { %v793_v63 = vpack.c.bf16 %v778_v60, %v777_v59  ;;  %v731_v8 = vadd.f32 %v730_v61, %v631_v53  ;;  %v783_v18 = vmax.f32 %v739_v15, 0.0 }
 0x2dd   : > { %v2884_v0 = vpop.f32.mrf.mxu0 }
 0x2de   : > { %943 = vmatmul.mubr.bf16.vlgmr.msra.gmra.mxu1 %v793_v63  ;;  %v781_v11 = vmax.f32 %v731_v8, 0.0  ;;  %v742_v12 = vadd.f32 %v2884_v0, %v631_v53 }
 0x2df   : > { %952 = vmatprep.mubr.bf16.mxu1 %v3472_v50  ;;  %v733_v3 = vpop.f32.mrf.mxu0 }
 0x2e0   : > { %v734_v6 = vadd.f32 %v733_v3, %v631_v53  ;;  %v784_v16 = vmax.f32 %v742_v12, 0.0 }
 0x2e1   : > { %v2887_v7 = vpop.f32.mrf.mxu0 }
 0x2e2   : > { %v782_v9 = vmax.f32 %v734_v6, 0.0  ;;  %v796_v19 = vpack.c.bf16 %v784_v16, %v783_v18  ;;  %v755_v29 = vadd.f32 %v2887_v7, %v631_v53 }
 0x2e3   : > { %v746_v10 = vpop.f32.mrf.mxu0 }
 0x2e4   : > { %v795_v13 = vpack.c.bf16 %v782_v9, %v781_v11  ;;  %v747_v22 = vadd.f32 %v746_v10, %v631_v53  ;;  %v787_v32 = vmax.f32 %v755_v29, 0.0 }
 0x2e5   : > { %v2888_v14 = vpop.f32.mrf.mxu0 }
 0x2e6   : > { %953 = vmatmul.mubr.bf16.gmra.mxu1 %v794_v5  ;;  %v785_v25 = vmax.f32 %v747_v22, 0.0  ;;  %v758_v26 = vadd.f32 %v2888_v14, %v631_v53 }
 0x2e7   : > { %962 = vmatprep.mubr.bf16.mxu1 %v3472_v50  ;;  %v749_v17 = vpop.f32.mrf.mxu0 }
 0x2e8   : > { %v750_v20 = vadd.f32 %v749_v17, %v631_v53  ;;  %v788_v30 = vmax.f32 %v758_v26, 0.0 }
 0x2e9   : > { %v2891_v21 = vpop.f32.mrf.mxu0 }
 0x2ea   : > { %v786_v23 = vmax.f32 %v750_v20, 0.0  ;;  %v798_v33 = vpack.c.bf16 %v788_v30, %v787_v32  ;;  %v771_v38 = vadd.f32 %v2891_v21, %v631_v53 }
 0x2eb   : > { %v762_v24 = vpop.f32.mrf.mxu0 }
 0x2ec   : > { %v797_v27 = vpack.c.bf16 %v786_v23, %v785_v25  ;;  %v763_v34 = vadd.f32 %v762_v24, %v631_v53  ;;  %v791_v41 = vmax.f32 %v771_v38, 0.0  ;;  %v3051_v38 = vld [vmem:[#allocation5 + $0x250] ss:$8 sps:$4 sm:$0xff]  }
 0x2ed   : > { %v2892_v28 = vpop.f32.mrf.mxu0 }
 0x2ee   : > { %963 = vmatmul.mubr.bf16.gmra.mxu1 %v795_v13  ;;  %v789_v36 = vmax.f32 %v763_v34, 0.0  ;;  %v774_v39 = vadd.f32 %v2892_v28, %v631_v53  ;;  %v3047_v34 = vld [vmem:[#allocation5 + $0x274] ss:$8 sps:$4 sm:$0xff]  }
 0x2ef   : > { %972 = vmatprep.mubr.bf16.mxu1 %v3472_v50  ;;  %v765_v31 = vpop.f32.mrf.mxu0  ;;  %1444 = vmatprep.subr.bf16.mxu0 %v3047_v34  ;;  %v3054_v34 = vld [vmem:[#allocation5 + $0x240] ss:$8 sps:$4 sm:$0xff]  }
 0x2f0   : > { %v766_v35 = vadd.f32 %v765_v31, %v631_v53  ;;  %v792_v42 = vmax.f32 %v774_v39, 0.0 }
 0x2f2   : > { %v790_v37 = vmax.f32 %v766_v35, 0.0  ;;  %v800_v43 = vpack.c.bf16 %v792_v42, %v791_v41  ;;  %v3050_v35 = vld [vmem:[#allocation5 + $0x264] ss:$8 sps:$4 sm:$0xff]  }
 0x2f4   : > { %v799_v40 = vpack.c.bf16 %v790_v37, %v789_v36  ;;  %v3048_v36 = vld [vmem:[#allocation5 + $0x260] ss:$8 sps:$4 sm:$0xff]   ;;  %v3053_v37 = vld [vmem:[#allocation5 + $0x254] ss:$8 sps:$4 sm:$0xff]  }
 0x2f6   : > { %973 = vmatmul.mubr.bf16.gmra.mxu1 %v796_v19 }
 0x2f7   : > { %982 = vmatprep.mubr.bf16.mxu1 %v3472_v50 }
 0x2fe   : > { %983 = vmatmul.mubr.bf16.gmra.mxu1 %v797_v27 }
 0x2ff   : > { %992 = vmatprep.mubr.bf16.mxu1 %v3472_v50 }
 0x306   : > { %993 = vmatmul.mubr.bf16.gmra.mxu1 %v798_v33  ;;  %v3045_v33 = vld [vmem:[#allocation5 + $0x270] ss:$8 sps:$4 sm:$0xff]  }
 0x307   : > { %1002 = vmatprep.mubr.bf16.mxu1 %v3472_v50  ;;  %1445 = vmatpush1.bf16.msra.mxu0 %v3045_v33 }
 0x308   : > { %1446 = vmatprep.subr.bf16.mxu0 %v3050_v35 }
 0x30b   : > { %1447 = vmatpush1.bf16.msra.mxu0 %v3048_v36 }
 0x30c   : > { %1448 = vmatprep.subr.bf16.mxu0 %v3053_v37  ;;  %v3059_v37 = vld [vmem:[#allocation5 + $0x234] ss:$8 sps:$4 sm:$0xff]  }
 0x30e   : > { %1003 = vmatmul.mubr.bf16.gmra.mxu1 %v799_v40 }
 0x30f   : > { %1012 = vmatprep.mubr.bf16.mxu1 %v3472_v50  ;;  %1449 = vmatpush1.bf16.msra.mxu0 %v3051_v38  ;;  %v3057_v38 = vld [vmem:[#allocation5 + $0x230] ss:$8 sps:$4 sm:$0xff]  }
 0x316   : > { %1013 = vmatmul.mubr.bf16.gmra.mxu1 %v800_v43 }
 0x39e   : > { %v944_v49 = vpop.f32.mrf.mxu1 }
 0x39f   : > { %v3678_v51 = vadd.f32 %v944_v49, %v823_v48 }
 0x3a0   : > { %v3680_v52 = vpop.f32.mrf.mxu1 }
 0x3a1   : > { %1023 = vmax.xlane.f32.xlu0 %v3678_v51 }
 0x3a2   : > { %v948_v53 = vpop.f32.mrf.mxu1 }
 0x3a3   : > { %v3683_v54 = vadd.f32 %v948_v53, %v823_v48 }
 0x3a4   : > { %v3685_v55 = vpop.f32.mrf.mxu1 }
 0x3a5   : > { %1025 = vmax.xlane.f32.xlu0 %v3683_v54 }
 0x3a6   : > { %v954_v56 = vpop.f32.mrf.mxu1 }
 0x3a7   : > { %v3688_v57 = vadd.f32 %v954_v56, %v823_v48 }
 0x3a8   : > { %v3690_v58 = vpop.f32.mrf.mxu1 }
 0x3a9   : > { %1027 = vmax.xlane.f32.xlu1 %v3688_v57 }
 0x3aa   : > { %v958_v59 = vpop.f32.mrf.mxu1 }
 0x3ab   : > { %v3693_v60 = vadd.f32 %v958_v59, %v823_v48 }
 0x3ac   : > { %v3695_v61 = vpop.f32.mrf.mxu1 }
 0x3ad   : > { %1029 = vmax.xlane.f32.xlu1 %v3693_v60 }
 0x3ae   : > { %v964_v62 = vpop.f32.mrf.mxu1 }
 0x3af   : > { %v3698_v63 = vadd.f32 %v964_v62, %v823_v48 }
 0x3b0   : > { %v3700_v0 = vpop.f32.mrf.mxu1 }
 0x3b1   : > { %1031 = vmax.xlane.f32.xlu0 %v3698_v63 }
 0x3b2   : > { %v968_v1 = vpop.f32.mrf.mxu1 }
 0x3b3   : > { %v3703_v2 = vadd.f32 %v968_v1, %v823_v48 }
 0x3b4   : > { %v3705_v3 = vpop.f32.mrf.mxu1 }
 0x3b5   : > { %1033 = vmax.xlane.f32.xlu1 %v3703_v2 }
 0x3b6   : > { %v974_v4 = vpop.f32.mrf.mxu1 }
 0x3b7   : > { %v3708_v5 = vadd.f32 %v974_v4, %v823_v48 }
 0x3b8   : > { %v3710_v6 = vpop.f32.mrf.mxu1 }
 0x3b9   : > { %1035 = vmax.xlane.f32.xlu0 %v3708_v5 }
 0x3ba   : > { %v978_v7 = vpop.f32.mrf.mxu1 }
 0x3bb   : > { %v3713_v8 = vadd.f32 %v978_v7, %v823_v48 }
 0x3bc   : > { %v3715_v9 = vpop.f32.mrf.mxu1 }
 0x3bd   : > { %1037 = vmax.xlane.f32.xlu1 %v3713_v8 }
 0x3be   : > { %v984_v10 = vpop.f32.mrf.mxu1 }
 0x3bf   : > { %v3718_v11 = vadd.f32 %v984_v10, %v823_v48 }
 0x3c0   : > { %v3720_v12 = vpop.f32.mrf.mxu1 }
 0x3c1   : > { %1039 = vmax.xlane.f32.xlu0 %v3718_v11 }
 0x3c2   : > { %v988_v13 = vpop.f32.mrf.mxu1 }
 0x3c3   : > { %v3723_v14 = vadd.f32 %v988_v13, %v823_v48 }
 0x3c4   : > { %v3725_v15 = vpop.f32.mrf.mxu1 }
 0x3c5   : > { %1041 = vmax.xlane.f32.xlu1 %v3723_v14 }
 0x3c6   : > { %v994_v16 = vpop.f32.mrf.mxu1 }
 0x3c7   : > { %v3728_v17 = vadd.f32 %v994_v16, %v823_v48 }
 0x3c8   : > { %v3730_v18 = vpop.f32.mrf.mxu1 }
 0x3c9   : > { %1043 = vmax.xlane.f32.xlu0 %v3728_v17 }
 0x3ca   : > { %v998_v19 = vpop.f32.mrf.mxu1 }
 0x3cb   : > { %v3733_v20 = vadd.f32 %v998_v19, %v823_v48 }
 0x3cc   : > { %v3735_v21 = vpop.f32.mrf.mxu1 }
 0x3cd   : > { %1045 = vmax.xlane.f32.xlu1 %v3733_v20 }
 0x3ce   : > { %v1004_v22 = vpop.f32.mrf.mxu1 }
 0x3cf   : > { %v3738_v23 = vadd.f32 %v1004_v22, %v823_v48 }
 0x3d0   : > { %v3740_v24 = vpop.f32.mrf.mxu1 }
 0x3d1   : > { %1047 = vmax.xlane.f32.xlu0 %v3738_v23 }
 0x3d2   : > { %v1008_v25 = vpop.f32.mrf.mxu1 }
 0x3d3   : > { %v3743_v26 = vadd.f32 %v1008_v25, %v823_v48 }
 0x3d4   : > { %v3745_v27 = vpop.f32.mrf.mxu1 }
 0x3d5   : > { %1049 = vmax.xlane.f32.xlu1 %v3743_v26 }
 0x3d6   : > { %v1014_v28 = vpop.f32.mrf.mxu1 }
 0x3d7   : > { %v3748_v29 = vadd.f32 %v1014_v28, %v823_v48 }
 0x3d8   : > { %v3750_v30 = vpop.f32.mrf.mxu1 }
 0x3d9   : > { %1051 = vmax.xlane.f32.xlu0 %v3748_v29 }
 0x3da   : > { %v1018_v31 = vpop.f32.mrf.mxu1 }
 0x3db   : > { %v3753_v32 = vadd.f32 %v1018_v31, %v823_v48  ;;  %v3056_v31 = vld [vmem:[#allocation5 + $0x244] ss:$8 sps:$4 sm:$0xff]  }
 0x3dc   : > { %1450 = vmatprep.subr.bf16.mxu0 %v3056_v31 }
 0x3dd   : > { %1053 = vmax.xlane.f32.xlu1 %v3753_v32  ;;  %1451 = vmatpush1.bf16.msra.mxu0 %v3054_v34 }
 0x3de   : > { %1452 = vmatprep.subr.bf16.mxu0 %v3059_v37 }
 0x3e1   : > { %1453 = vmatpush1.bf16.msra.mxu0 %v3057_v38 }
 0x42a   : > { %v1024_v39 = vpop.xlane.xlu0 %1023 }
 0x42b   : > { %v1055_v40 = vsub.f32 %v3678_v51, %v1024_v39 }
 0x42d   : > { %v1071_v41 = vmul.f32 1.442695, %v1055_v40 }
 0x42e   : > { %v1026_v42 = vpop.xlane.xlu0 %1025 }
 0x42f   : > { %3141 = vpow2.f32 %v1071_v41  ;;  %v1056_v43 = vsub.f32 %v3683_v54, %v1026_v42 }
 0x431   : > { %v1073_v44 = vmul.f32 1.442695, %v1056_v43  ;;  %v3060_v43 = vld [vmem:[#allocation5 + $0x220] ss:$8 sps:$4 sm:$0xff]  }
 0x432   : > { %v1028_v48 = vpop.xlane.xlu1 %1027 }
 0x433   : > { %3143 = vpow2.f32 %v1073_v44  ;;  %v1057_v49 = vsub.f32 %v3688_v57, %v1028_v48 }
 0x435   : > { %v1075_v53 = vmul.f32 1.442695, %v1057_v49 }
 0x436   : > { %v1030_v56 = vpop.xlane.xlu1 %1029 }
 0x437   : > { %3145 = vpow2.f32 %v1075_v53  ;;  %v1058_v59 = vsub.f32 %v3693_v60, %v1030_v56  ;;  %v3063_v56 = vld [vmem:[#allocation5 + $0x210] ss:$8 sps:$4 sm:$0xff]  }
 0x439   : > { %v1077_v62 = vmul.f32 1.442695, %v1058_v59 }
 0x43a   : > { %v1032_v1 = vpop.xlane.xlu0 %1031 }
 0x43b   : > { %3147 = vpow2.f32 %v1077_v62  ;;  %v1059_v51 = vsub.f32 %v3698_v63, %v1032_v1 }
 0x43c   : > { %v3761_v4 = vpop.eup %3141 }
 0x43d   : > { %v1079_v7 = vmul.f32 1.442695, %v1059_v51  ;;  %1103 = vadd.xlane.f32.xlu0 %v3761_v4  ;;  %v3068_v51 = vld [vmem:[#allocation5 + $0x204] ss:$8 sps:$4 sm:$0xff]  }
 0x43e   : > { %v1034_v54 = vpop.xlane.xlu1 %1033 }
 0x43f   : > { %3149 = vpow2.f32 %v1079_v7  ;;  %v1060_v10 = vsub.f32 %v3703_v2, %v1034_v54 }
 0x440   : > { %v3765_v57 = vpop.eup %3143 }
 0x441   : > { %v1081_v13 = vmul.f32 1.442695, %v1060_v10  ;;  %1105 = vadd.xlane.f32.xlu1 %v3765_v57 }
 0x442   : > { %v1036_v60 = vpop.xlane.xlu0 %1035 }
 0x443   : > { %3151 = vpow2.f32 %v1081_v13  ;;  %v1061_v16 = vsub.f32 %v3708_v5, %v1036_v60 }
 0x444   : > { %v3769_v19 = vpop.eup %3145 }
 0x445   : > { %v1083_v63 = vmul.f32 1.442695, %v1061_v16  ;;  %1107 = vadd.xlane.f32.xlu0 %v3769_v19 }
 0x446   : > { %v1038_v22 = vpop.xlane.xlu1 %1037 }
 0x447   : > { %3153 = vpow2.f32 %v1083_v63  ;;  %v1062_v25 = vsub.f32 %v3713_v8, %v1038_v22 }
 0x448   : > { %v3773_v28 = vpop.eup %3147 }
 0x449   : > { %v1085_v2 = vmul.f32 1.442695, %v1062_v25  ;;  %1109 = vadd.xlane.f32.xlu1 %v3773_v28 }
 0x44a   : > { %v1040_v33 = vpop.xlane.xlu0 %1039 }
 0x44b   : > { %3155 = vpow2.f32 %v1085_v2  ;;  %v1063_v5 = vsub.f32 %v3718_v11, %v1040_v33  ;;  %v3062_v11 = vld [vmem:[#allocation5 + $0x224] ss:$8 sps:$4 sm:$0xff]  }
 0x44c   : > { %v3777_v35 = vpop.eup %3149  ;;  %1454 = vmatprep.subr.bf16.mxu0 %v3062_v11  ;;  %v3071_v11 = vld [vmem:[#allocation5 + $0x2f4] ss:$8 sps:$4 sm:$0xff]  }
 0x44d   : > { %v1087_v36 = vmul.f32 1.442695, %v1063_v5  ;;  %1111 = vadd.xlane.f32.xlu0 %v3777_v35  ;;  %1455 = vmatpush1.bf16.msra.mxu0 %v3060_v43  ;;  %v3072_v43 = vld [vmem:[#allocation5 + $0x2e0] ss:$8 sps:$4 sm:$0xff]  }
 0x44e   : > { %v1042_v8 = vpop.xlane.xlu1 %1041  ;;  %1810 = vmatprep.subr.bf16.mxu1 %v3071_v11 }
 0x44f   : > { %3157 = vpow2.f32 %v1087_v36  ;;  %v1064_v39 = vsub.f32 %v3723_v14, %v1042_v8  ;;  %v3065_v14 = vld [vmem:[#allocation5 + $0x214] ss:$8 sps:$4 sm:$0xff]  }
 0x450   : > { %v3781_v40 = vpop.eup %3151  ;;  %1456 = vmatprep.subr.bf16.mxu0 %v3065_v14  ;;  %v3083_v14 = vld [vmem:[#allocation5 + $0x2b4] ss:$8 sps:$4 sm:$0xff]  }
 0x451   : > { %v1089_v41 = vmul.f32 1.442695, %v1064_v39  ;;  %1113 = vadd.xlane.f32.xlu1 %v3781_v40  ;;  %1457 = vmatpush1.bf16.msra.mxu0 %v3063_v56  ;;  %v3086_v56 = vld [vmem:[#allocation5 + $0x2a4] ss:$8 sps:$4 sm:$0xff]  }
 0x452   : > { %v1044_v42 = vpop.xlane.xlu0 %1043  ;;  %1458 = vmatprep.subr.bf16.mxu0 %v3068_v51 }
 0x453   : > { %3159 = vpow2.f32 %v1089_v41  ;;  %v1065_v44 = vsub.f32 %v3728_v17, %v1044_v42  ;;  %v3066_v17 = vld [vmem:[#allocation5 + $0x200] ss:$8 sps:$4 sm:$0xff]   ;;  %v1020_v41 = vpop.f32.mrf.mxu1  ;;  %v3074_v42 = vld [vmem:[#allocation5 + $0x2e4] ss:$8 sps:$4 sm:$0xff]  }
 0x454   : > { %v3785_v48 = vpop.eup %3153 }
 0x455   : > { %v1091_v49 = vmul.f32 1.442695, %v1065_v44  ;;  %1115 = vadd.xlane.f32.xlu0 %v3785_v48  ;;  %1459 = vmatpush1.bf16.msra.mxu0 %v3066_v17  ;;  %v3080_v44 = vld [vmem:[#allocation5 + $0x2c4] ss:$8 sps:$4 sm:$0xff]   ;;  %v3089_v17 = vld [vmem:[#allocation5 + $0x294] ss:$8 sps:$4 sm:$0xff]  }
 0x456   : > { %v1046_v53 = vpop.xlane.xlu1 %1045 }
 0x457   : > { %3161 = vpow2.f32 %v1091_v49  ;;  %v1066_v59 = vsub.f32 %v3733_v20, %v1046_v53  ;;  %v3078_v49 = vld [vmem:[#allocation5 + $0x2c0] ss:$8 sps:$4 sm:$0xff]   ;;  %v3081_v53 = vld [vmem:[#allocation5 + $0x2b0] ss:$8 sps:$4 sm:$0xff]  }
 0x458   : > { %v3789_v62 = vpop.eup %3155 }
 0x459   : > { %v1093_v1 = vmul.f32 1.442695, %v1066_v59  ;;  %1117 = vadd.xlane.f32.xlu1 %v3789_v62 }
 0x45a   : > { %v1048_v7 = vpop.xlane.xlu0 %1047 }
 0x45b   : > { %3163 = vpow2.f32 %v1093_v1  ;;  %v1067_v54 = vsub.f32 %v3738_v23, %v1048_v7  ;;  %v3084_v1 = vld [vmem:[#allocation5 + $0x2a0] ss:$8 sps:$4 sm:$0xff]   ;;  %v3087_v7 = vld [vmem:[#allocation5 + $0x290] ss:$8 sps:$4 sm:$0xff]  }
 0x45c   : > { %v3793_v10 = vpop.eup %3157 }
 0x45d   : > { %v1095_v13 = vmul.f32 1.442695, %v1067_v54  ;;  %1119 = vadd.xlane.f32.xlu0 %v3793_v10  ;;  %v3092_v54 = vld [vmem:[#allocation5 + $0x284] ss:$8 sps:$4 sm:$0xff]  }
 0x45e   : > { %v1050_v20 = vpop.xlane.xlu1 %1049 }
 0x45f   : > { %3165 = vpow2.f32 %v1095_v13  ;;  %v1068_v60 = vsub.f32 %v3743_v26, %v1050_v20  ;;  %v3090_v20 = vld [vmem:[#allocation5 + $0x280] ss:$8 sps:$4 sm:$0xff]  }
 0x460   : > { %v3797_v16 = vpop.eup %3159 }
 0x461   : > { %v1097_v63 = vmul.f32 1.442695, %v1068_v60  ;;  %1121 = vadd.xlane.f32.xlu1 %v3797_v16  ;;  %v3095_v60 = vld [vmem:[#allocation5 + $0x374] ss:$8 sps:$4 sm:$0xff]  }
 0x462   : > { %v1052_v22 = vpop.xlane.xlu0 %1051 }
 0x463   : > { %3167 = vpow2.f32 %v1097_v63  ;;  %v1069_v23 = vsub.f32 %v3748_v29, %v1052_v22  ;;  %v3812_v29 = vsub.s32 1, %v3669_v45 }
 0x464   : > { %v3801_v25 = vpop.eup %3161 }
 0x465   : > { %v1099_v2 = vmul.f32 1.442695, %v1069_v23  ;;  %1123 = vadd.xlane.f32.xlu0 %v3801_v25  ;;  %v3093_v23 = vld [vmem:[#allocation5 + $0x370] ss:$8 sps:$4 sm:$0xff]  }
 0x466   : > { %v1054_v31 = vpop.xlane.xlu1 %1053 }
 0x467   : > { %3169 = vpow2.f32 %v1099_v2  ;;  %v1070_v33 = vsub.f32 %v3753_v32, %v1054_v31  ;;  %v827_v32 = vrot.slane %v3674_v47, %v3812_v29  ;;  %v3098_v2 = vld [vmem:[#allocation5 + $0x364] ss:$8 sps:$4 sm:$0xff]  }
 0x468   : > { %v3805_v34 = vpop.eup %3163 }
 0x469   : > { %v1101_v26 = vmul.f32 1.442695, %v1070_v33  ;;  %1125 = vadd.xlane.f32.xlu1 %v3805_v34  ;;  %v3823_v8 = vadd.f32 %v3680_v52, %v827_v32  ;;  %v3830_v45 = vadd.f32 %v3685_v55, %v827_v32  ;;  %v3833_v39 = vadd.f32 %v3690_v58, %v827_v32 }
 0x46a   : > { %v3838_v47 = vadd.f32 %v3695_v61, %v827_v32  ;;  %v3841_v52 = vadd.f32 %v3700_v0, %v827_v32  ;;  %v3846_v55 = vadd.f32 %v3705_v3, %v827_v32  ;;  %v3849_v58 = vadd.f32 %v3710_v6, %v827_v32 }
 0x46b   : > { %3171 = vpow2.f32 %v1101_v26  ;;  %v3854_v61 = vadd.f32 %v3715_v9, %v827_v32  ;;  %v3857_v0 = vadd.f32 %v3720_v12, %v827_v32  ;;  %v3862_v3 = vadd.f32 %v3725_v15, %v827_v32 }
 0x46c   : > { %v3808_v5 = vpop.eup %3165  ;;  %v3865_v6 = vadd.f32 %v3730_v18, %v827_v32  ;;  %v3870_v9 = vadd.f32 %v3735_v21, %v827_v32  ;;  %v3873_v12 = vadd.f32 %v3740_v24, %v827_v32  ;;  %v3878_v15 = vadd.f32 %v3745_v27, %v827_v32  ;;  %v3069_v24 = vld [vmem:[#allocation5 + $0x2f0] ss:$8 sps:$4 sm:$0xff]   ;;  %v3077_v27 = vld [vmem:[#allocation5 + $0x2d4] ss:$8 sps:$4 sm:$0xff]  }
 0x46d   : > { %1127 = vadd.xlane.f32.xlu0 %v3808_v5  ;;  %v3881_v18 = vadd.f32 %v3750_v30, %v827_v32  ;;  %v3885_v21 = vadd.f32 %v1020_v41, %v827_v32  ;;  %1811 = vmatpush1.bf16.msra.mxu1 %v3069_v24  ;;  %v3075_v30 = vld [vmem:[#allocation5 + $0x2d0] ss:$8 sps:$4 sm:$0xff]   ;;  %v3096_v32 = vld [vmem:[#allocation5 + $0x360] ss:$8 sps:$4 sm:$0xff]   ;;  %v3101_v24 = vld [vmem:[#allocation5 + $0x354] ss:$8 sps:$4 sm:$0xff]  }
 0x46e   : > { %1812 = vmatprep.subr.bf16.mxu1 %v3074_v42  ;;  %v3301_v42 = vld [vmem:[%s3634_s30] sm:$0xff] }
 0x470   : > { %v3814_v36 = vpop.eup %3167 }
 0x471   : > { %1129 = vadd.xlane.f32.xlu1 %v3814_v36  ;;  %1813 = vmatpush1.bf16.msra.mxu1 %v3072_v43 }
 0x472   : > { %1814 = vmatprep.subr.bf16.mxu1 %v3077_v27  ;;  %v3302_v27 = vld [vmem:[%s3634_s30 + $0x8] sm:$0xff] }
 0x474   : > { %v3819_v37 = vpop.eup %3169 }
 0x475   : > { %1131 = vadd.xlane.f32.xlu0 %v3819_v37  ;;  %1815 = vmatpush1.bf16.msra.mxu1 %v3075_v30 }
 0x476   : > { %1816 = vmatprep.subr.bf16.mxu1 %v3080_v44 }
 0x478   : > { %v3825_v38 = vpop.eup %3171 }
 0x479   : > { %1133 = vadd.xlane.f32.xlu1 %v3825_v38  ;;  %1167 = vmax.xlane.f32.xlu0 %v3823_v8 }
 0x47a   : > { %1817 = vmatpush1.bf16.msra.mxu1 %v3078_v49  ;;  %v3099_v49 = vld [vmem:[#allocation5 + $0x350] ss:$8 sps:$4 sm:$0xff]  }
 0x47b   : > { %1818 = vmatprep.subr.bf16.mxu1 %v3083_v14 }
 0x47d   : > { %1169 = vmax.xlane.f32.xlu1 %v3830_v45  ;;  %1171 = vmax.xlane.f32.xlu0 %v3833_v39 }
 0x47e   : > { %1819 = vmatpush1.bf16.msra.mxu1 %v3081_v53 }
 0x47f   : > { %1820 = vmatprep.subr.bf16.mxu1 %v3086_v56 }
 0x481   : > { %1173 = vmax.xlane.f32.xlu1 %v3838_v47  ;;  %1175 = vmax.xlane.f32.xlu0 %v3841_v52 }
 0x482   : > { %1821 = vmatpush1.bf16.msra.mxu1 %v3084_v1 }
 0x483   : > { %1822 = vmatprep.subr.bf16.mxu1 %v3089_v17  ;;  %v3107_v17 = vld [vmem:[#allocation5 + $0x334] ss:$8 sps:$4 sm:$0xff]  }
 0x485   : > { %1177 = vmax.xlane.f32.xlu1 %v3846_v55  ;;  %1179 = vmax.xlane.f32.xlu0 %v3849_v58 }
 0x486   : > { %1823 = vmatpush1.bf16.msra.mxu1 %v3087_v7  ;;  %v3303_v7 = vld [vmem:[%s3634_s30 + $0x10] sm:$0xff] }
 0x487   : > { %1824 = vmatprep.subr.bf16.mxu1 %v3092_v54 }
 0x489   : > { %1181 = vmax.xlane.f32.xlu1 %v3854_v61  ;;  %1183 = vmax.xlane.f32.xlu0 %v3857_v0 }
 0x48a   : > { %1825 = vmatpush1.bf16.msra.mxu1 %v3090_v20 }
 0x48b   : > { %1826 = vmatprep.subr.bf16.mxu1 %v3095_v60 }
 0x48d   : > { %1185 = vmax.xlane.f32.xlu1 %v3862_v3  ;;  %1187 = vmax.xlane.f32.xlu0 %v3865_v6 }
 0x48e   : > { %1827 = vmatpush2.bf16.msra.mxu1 %v3093_v23 }
 0x48f   : > { %1828 = vmatprep.subr.bf16.mxu1 %v3098_v2 }
 0x491   : > { %1189 = vmax.xlane.f32.xlu1 %v3870_v9  ;;  %1191 = vmax.xlane.f32.xlu0 %v3873_v12 }
 0x492   : > { %1829 = vmatpush2.bf16.msra.mxu1 %v3096_v32  ;;  %v3306_v32 = vld [vmem:[%s3634_s30 + $0x28] sm:$0xff] }
 0x493   : > { %1830 = vmatprep.subr.bf16.mxu1 %v3101_v24 }
 0x495   : > { %1193 = vmax.xlane.f32.xlu1 %v3878_v15  ;;  %1195 = vmax.xlane.f32.xlu0 %v3881_v18 }
 0x496   : > { %1831 = vmatpush2.bf16.msra.mxu1 %v3099_v49  ;;  %v3308_v49 = vld [vmem:[%s3634_s30 + $0x38] sm:$0xff] }
 0x499   : > { %1197 = vmax.xlane.f32.xlu1 %v3885_v21 }
 0x4c6   : > { %v1104_v59 = vpop.xlane.xlu0 %1103 }
 0x4c7   : > { %3173 = vrcp.f32 %v1104_v59  ;;  %v3102_v59 = vld [vmem:[#allocation5 + $0x340] ss:$8 sps:$4 sm:$0xff]  }
 0x4ca   : > { %v1106_v51 = vpop.xlane.xlu1 %1105 }
 0x4cb   : > { %3175 = vrcp.f32 %v1106_v51 }
 0x4ce   : > { %v1108_v13 = vpop.xlane.xlu0 %1107 }
 0x4cf   : > { %3177 = vrcp.f32 %v1108_v13  ;;  %v3304_v13 = vld [vmem:[%s3634_s30 + $0x18] sm:$0xff] }
 0x4d2   : > { %v1110_v63 = vpop.xlane.xlu1 %1109 }
 0x4d3   : > { %3179 = vrcp.f32 %v1110_v63 }
 0x4d4   : > { %v3174_v22 = vpop.eup %3173 }
 0x4d5   : > { %v1151_v33 = vmul.f32 %v3174_v22, %v3761_v4  ;;  %v3104_v4 = vld [vmem:[#allocation5 + $0x344] ss:$8 sps:$4 sm:$0xff]  }
 0x4d6   : > { %v1112_v31 = vpop.xlane.xlu0 %1111  ;;  %1832 = vmatprep.subr.bf16.mxu1 %v3104_v4 }
 0x4d7   : > { %3181 = vrcp.f32 %v1112_v31  ;;  %v1311_v43 = vmul.f32 %v3301_v42, %v1151_v33  ;;  %1833 = vmatpush2.bf16.msra.mxu1 %v3102_v59  ;;  %v3305_v33 = vld [vmem:[%s3634_s30 + $0x20] sm:$0xff] }
 0x4d8   : > { %v3176_v26 = vpop.eup %3175  ;;  %1834 = vmatprep.subr.bf16.mxu1 %v3107_v17 }
 0x4d9   : > { %v1152_v41 = vmul.f32 %v3176_v26, %v3765_v57 }
 0x4da   : > { %v1114_v11 = vpop.xlane.xlu1 %1113 }
 0x4db   : > { %3183 = vrcp.f32 %v1114_v11  ;;  %v1312_v30 = vmul.f32 %v3302_v27, %v1152_v41 }
 0x4dc   : > { %v3178_v44 = vpop.eup %3177 }
 0x4dd   : > { %v1327_v14 = vpack.c.bf16 %v1312_v30, %v1311_v43  ;;  %v1153_v57 = vmul.f32 %v3178_v44, %v3769_v19  ;;  %v3105_v19 = vld [vmem:[#allocation5 + $0x330] ss:$8 sps:$4 sm:$0xff]  }
 0x4de   : > { %v1116_v53 = vpop.xlane.xlu0 %1115  ;;  %1835 = vmatpush2.bf16.msra.mxu1 %v3105_v19  ;;  %v3307_v30 = vld [vmem:[%s3634_s30 + $0x30] sm:$0xff] }
 0x4df   : > { %3185 = vrcp.f32 %v1116_v53  ;;  %1477 = vmatmul.mubr.bf16.vlgmr.msra.gmra.mxu0 %v1327_v14  ;;  %v1313_v54 = vmul.f32 %v3303_v7, %v1153_v57 }
 0x4e0   : > { %v3180_v56 = vpop.eup %3179  ;;  %1486 = vmatprep.mubr.bf16.mxu0 %v3472_v50 }
 0x4e1   : > { %v1154_v1 = vmul.f32 %v3180_v56, %v3773_v28 }
 0x4e2   : > { %v1118_v51 = vpop.xlane.xlu1 %1117 }
 0x4e3   : > { %3187 = vrcp.f32 %v1118_v51  ;;  %v1314_v20 = vmul.f32 %v3304_v13, %v1154_v1  ;;  %v3309_v1 = vld [vmem:[%s3634_s30 + $0x40] sm:$0xff]  ;;  %v3310_v51 = vld [vmem:[%s3634_s30 + $0x48] sm:$0xff] }
 0x4e4   : > { %v3182_v60 = vpop.eup %3181 }
 0x4e5   : > { %v1328_v63 = vpack.c.bf16 %v1314_v20, %v1313_v54  ;;  %v1155_v28 = vmul.f32 %v3182_v60, %v3777_v35 }
 0x4e6   : > { %v1120_v22 = vpop.xlane.xlu0 %1119 }
 0x4e7   : > { %3189 = vrcp.f32 %v1120_v22  ;;  %1487 = vmatmul.mubr.bf16.gmra.mxu0 %v1328_v63  ;;  %v1315_v26 = vmul.f32 %v3305_v33, %v1155_v28  ;;  %v3311_v28 = vld [vmem:[%s3634_s30 + $0x50] sm:$0xff] }
 0x4e8   : > { %v3184_v23 = vpop.eup %3183  ;;  %1496 = vmatprep.mubr.bf16.mxu0 %v3472_v50 }
 0x4e9   : > { %v1156_v2 = vmul.f32 %v3184_v23, %v3781_v40 }
 0x4ea   : > { %v1122_v31 = vpop.xlane.xlu1 %1121 }
 0x4eb   : > { %3191 = vrcp.f32 %v1122_v31  ;;  %v1316_v41 = vmul.f32 %v3306_v32, %v1156_v2  ;;  %v3312_v2 = vld [vmem:[%s3634_s30 + $0x58] sm:$0xff] }
 0x4ec   : > { %v3186_v24 = vpop.eup %3185 }
 0x4ed   : > { %v1329_v11 = vpack.c.bf16 %v1316_v41, %v1315_v26  ;;  %v1157_v35 = vmul.f32 %v3186_v24, %v3785_v48 }
 0x4ee   : > { %v1124_v42 = vpop.xlane.xlu0 %1123 }
 0x4ef   : > { %3193 = vrcp.f32 %v1124_v42  ;;  %1497 = vmatmul.mubr.bf16.gmra.mxu0 %v1329_v11  ;;  %v1317_v44 = vmul.f32 %v3307_v30, %v1157_v35  ;;  %v3313_v30 = vld [vmem:[%s3634_s30 + $0x60] sm:$0xff] }
 0x4f0   : > { %v3188_v43 = vpop.eup %3187  ;;  %1506 = vmatprep.mubr.bf16.mxu0 %v3472_v50 }
 0x4f1   : > { %v1158_v40 = vmul.f32 %v3188_v43, %v3789_v62 }
 0x4f2   : > { %v1126_v27 = vpop.xlane.xlu1 %1125 }
 0x4f3   : > { %3195 = vrcp.f32 %v1126_v27  ;;  %v1318_v14 = vmul.f32 %v3308_v49, %v1158_v40 }
 0x4f4   : > { %v3190_v4 = vpop.eup %3189 }
 0x4f5   : > { %v1330_v53 = vpack.c.bf16 %v1318_v14, %v1317_v44  ;;  %v1159_v48 = vmul.f32 %v3190_v4, %v3793_v10 }
 0x4f6   : > { %v1128_v57 = vpop.xlane.xlu0 %1127 }
 0x4f7   : > { %3197 = vrcp.f32 %v1128_v57  ;;  %1507 = vmatmul.mubr.bf16.gmra.mxu0 %v1330_v53  ;;  %v1319_v17 = vmul.f32 %v3309_v1, %v1159_v48 }
 0x4f8   : > { %v3192_v56 = vpop.eup %3191  ;;  %1516 = vmatprep.mubr.bf16.mxu0 %v3472_v50 }
 0x4f9   : > { %v1160_v62 = vmul.f32 %v3192_v56, %v3797_v16 }
 0x4fa   : > { %v1130_v59 = vpop.xlane.xlu1 %1129 }
 0x4fb   : > { %3199 = vrcp.f32 %v1130_v59  ;;  %v1320_v7 = vmul.f32 %v3310_v51, %v1160_v62 }
 0x4fc   : > { %v3194_v54 = vpop.eup %3193 }
 0x4fd   : > { %v1331_v13 = vpack.c.bf16 %v1320_v7, %v1319_v17  ;;  %v1161_v10 = vmul.f32 %v3194_v54, %v3801_v25  ;;  %v3315_v54 = vld [vmem:[%s3634_s30 + $0x70] sm:$0xff] }
 0x4fe   : > { %v1132_v20 = vpop.xlane.xlu0 %1131 }
 0x4ff   : > { %3201 = vrcp.f32 %v1132_v20  ;;  %1517 = vmatmul.mubr.bf16.gmra.mxu0 %v1331_v13  ;;  %v1321_v23 = vmul.f32 %v3311_v28, %v1161_v10  ;;  %v3316_v20 = vld [vmem:[%s3634_s30 + $0x78] sm:$0xff] }
 0x500   : > { %v3196_v60 = vpop.eup %3195  ;;  %1526 = vmatprep.mubr.bf16.mxu0 %v3472_v50 }
 0x501   : > { %v1162_v16 = vmul.f32 %v3196_v60, %v3805_v34 }
 0x502   : > { %v1134_v19 = vpop.xlane.xlu1 %1133  ;;  %v1168_v63 = vpop.xlane.xlu0 %1167 }
 0x503   : > { %3203 = vrcp.f32 %v1134_v19  ;;  %v1199_v22 = vsub.f32 %v3823_v8, %v1168_v63  ;;  %v1322_v31 = vmul.f32 %v3312_v2, %v1162_v16 }
 0x504   : > { %v3198_v33 = vpop.eup %3197 }
 0x505   : > { %v1215_v26 = vmul.f32 1.442695, %v1199_v22  ;;  %v1332_v32 = vpack.c.bf16 %v1322_v31, %v1321_v23  ;;  %v1163_v24 = vmul.f32 %v3198_v33, %v3808_v5 }
 0x506   : > { %v1170_v41 = vpop.xlane.xlu1 %1169  ;;  %v1172_v25 = vpop.xlane.xlu0 %1171 }
 0x507   : > { %3205 = vpow2.f32 %v1215_v26  ;;  %v1200_v34 = vsub.f32 %v3830_v45, %v1170_v41  ;;  %v1201_v11 = vsub.f32 %v3833_v39, %v1172_v25  ;;  %1527 = vmatmul.mubr.bf16.gmra.mxu0 %v1332_v32  ;;  %v1323_v44 = vmul.f32 %v3313_v30, %v1163_v24  ;;  %v3314_v45 = vld [vmem:[%s3634_s30 + $0x68] sm:$0xff] }
 0x508   : > { %v3200_v8 = vpop.eup %3199  ;;  %1536 = vmatprep.mubr.bf16.mxu0 %v3472_v50 }
 0x509   : > { %v1217_v42 = vmul.f32 1.442695, %v1200_v34  ;;  %v1219_v35 = vmul.f32 1.442695, %v1201_v11  ;;  %v1164_v43 = vmul.f32 %v3200_v8, %v3814_v36 }
 0x50a   : > { %v1174_v40 = vpop.xlane.xlu1 %1173  ;;  %v1176_v27 = vpop.xlane.xlu0 %1175 }
 0x50b   : > { %3207 = vpow2.f32 %v1217_v42  ;;  %v1202_v5 = vsub.f32 %v3838_v47, %v1174_v40  ;;  %v1203_v49 = vsub.f32 %v3841_v52, %v1176_v27  ;;  %v1324_v14 = vmul.f32 %v3314_v45, %v1164_v43  ;;  %v3108_v43 = vld [vmem:[#allocation5 + $0x320] ss:$8 sps:$4 sm:$0xff]   ;;  %v3113_v27 = vld [vmem:[#allocation5 + $0x314] ss:$8 sps:$4 sm:$0xff]   ;;  %v3116_v45 = vld [vmem:[#allocation5 + $0x304] ss:$8 sps:$4 sm:$0xff]  }
 0x50c   : > { %v3202_v39 = vpop.eup %3201  ;;  %3209 = vpow2.f32 %v1219_v35 }
 0x50d   : > { %v1221_v4 = vmul.f32 1.442695, %v1202_v5  ;;  %v1223_v53 = vmul.f32 1.442695, %v1203_v49  ;;  %v1333_v57 = vpack.c.bf16 %v1324_v14, %v1323_v44  ;;  %v1165_v36 = vmul.f32 %v3202_v39, %v3819_v37  ;;  %v3111_v5 = vld [vmem:[#allocation5 + $0x310] ss:$8 sps:$4 sm:$0xff]  }
 0x50e   : > { %v1178_v48 = vpop.xlane.xlu1 %1177  ;;  %v1180_v56 = vpop.xlane.xlu0 %1179  ;;  %v3114_v14 = vld [vmem:[#allocation5 + $0x300] ss:$8 sps:$4 sm:$0xff]  }
 0x50f   : > { %3211 = vpow2.f32 %v1221_v4  ;;  %v1204_v62 = vsub.f32 %v3846_v55, %v1178_v48  ;;  %v1205_v47 = vsub.f32 %v3849_v58, %v1180_v56  ;;  %1537 = vmatmul.mubr.bf16.gmra.mxu0 %v1333_v57  ;;  %v1325_v13 = vmul.f32 %v3315_v54, %v1165_v36  ;;  %v3117_v56 = vld [vmem:[#allocation5 + $0x470] ss:$8 sps:$4 sm:$0xff]   ;;  %v3127_v54 = vld [vmem:[#allocation5 + $0x420] ss:$8 sps:$4 sm:$0xff]  }
 0x510   : > { %v3204_v52 = vpop.eup %3203  ;;  %3213 = vpow2.f32 %v1223_v53  ;;  %1546 = vmatprep.mubr.bf16.mxu0 %v3472_v50  ;;  %v3118_v36 = vld [vmem:[#allocation5 + $0x3f0] ss:$8 sps:$4 sm:$0xff]   ;;  %2717 = vmatprep.subr.bf16.mxu0 %v3117_v56 }
 0x511   : > { %v1225_v59 = vmul.f32 1.442695, %v1204_v62  ;;  %v1227_v1 = vmul.f32 1.442695, %v1205_v47  ;;  %v1166_v17 = vmul.f32 %v3204_v52, %v3825_v38  ;;  %v3119_v62 = vld [vmem:[#allocation5 + $0x460] ss:$8 sps:$4 sm:$0xff]   ;;  %2718 = vmatpush3.bf16.msra.mxu0 %v3118_v36 }
 0x512   : > { %v1182_v51 = vpop.xlane.xlu1 %1181  ;;  %v1184_v7 = vpop.xlane.xlu0 %1183  ;;  %v3120_v47 = vld [vmem:[#allocation5 + $0x3e0] ss:$8 sps:$4 sm:$0xff]   ;;  %2719 = vmatprep.subr.bf16.mxu0 %v3119_v62  ;;  %v3121_v52 = vld [vmem:[#allocation5 + $0x450] ss:$8 sps:$4 sm:$0xff]  }
 0x513   : > { %3215 = vpow2.f32 %v1225_v59  ;;  %v1206_v37 = vsub.f32 %v3854_v61, %v1182_v51  ;;  %v1207_v55 = vsub.f32 %v3857_v0, %v1184_v7  ;;  %v1326_v58 = vmul.f32 %v3316_v20, %v1166_v17  ;;  %v3122_v59 = vld [vmem:[#allocation5 + $0x3d0] ss:$8 sps:$4 sm:$0xff]   ;;  %v3124_v17 = vld [vmem:[#allocation5 + $0x3c0] ss:$8 sps:$4 sm:$0xff]  }
 0x514   : > { %v3936_v10 = vpop.eup %3205  ;;  %3217 = vpow2.f32 %v1227_v1  ;;  %v3123_v1 = vld [vmem:[#allocation5 + $0x440] ss:$8 sps:$4 sm:$0xff]   ;;  %v3125_v51 = vld [vmem:[#allocation5 + $0x430] ss:$8 sps:$4 sm:$0xff]  }
 0x515   : > { %v1229_v60 = vmul.f32 1.442695, %v1206_v37  ;;  %v1231_v50 = vmul.f32 1.442695, %v1207_v55  ;;  %1247 = vadd.xlane.f32.xlu0 %v3936_v10  ;;  %v1334_v16 = vpack.c.bf16 %v1326_v58, %v1325_v13  ;;  %2720 = vmatpush3.bf16.msra.mxu0 %v3120_v47  ;;  %v3126_v7 = vld [vmem:[#allocation5 + $0x3b0] ss:$8 sps:$4 sm:$0xff]  }
 0x516   : > { %v1186_v38 = vpop.xlane.xlu1 %1185  ;;  %v1188_v19 = vpop.xlane.xlu0 %1187  ;;  %2721 = vmatprep.subr.bf16.mxu0 %v3121_v52  ;;  %v3128_v13 = vld [vmem:[#allocation5 + $0x3a0] ss:$8 sps:$4 sm:$0xff]   ;;  %v3129_v37 = vld [vmem:[#allocation5 + $0x410] ss:$8 sps:$4 sm:$0xff]  }
 0x517   : > { %3219 = vpow2.f32 %v1229_v60  ;;  %v1208_v63 = vsub.f32 %v3862_v3, %v1186_v38  ;;  %v1209_v22 = vsub.f32 %v3865_v6, %v1188_v19  ;;  %1547 = vmatmul.mubr.bf16.gmra.mxu0 %v1334_v16  ;;  %v3130_v55 = vld [vmem:[#allocation5 + $0x390] ss:$8 sps:$4 sm:$0xff]   ;;  %v1352_v20 = vld [vmem:[#allocation7 + $0x4] ss:$8 sm:$0x3] }
 0x518   : > { %v3941_v61 = vpop.eup %3207  ;;  %3221 = vpow2.f32 %v1231_v50  ;;  %v3992_v60 = vrot.slane %v1352_v20, %v3812_v29  ;;  %v3995_v50 = vrot.slane %v1352_v20, %v3672_v46 }
 0x519   : > { %v3943_v0 = vpop.eup %3209  ;;  %v1233_v28 = vmul.f32 1.442695, %v1208_v63  ;;  %v1235_v23 = vmul.f32 1.442695, %v1209_v22  ;;  %1249 = vadd.xlane.f32.xlu1 %v3941_v61  ;;  %2722 = vmatpush3.bf16.msra.mxu0 %v3122_v59 }
 0x51a   : > { %1251 = vadd.xlane.f32.xlu0 %v3943_v0  ;;  %v1190_v2 = vpop.xlane.xlu1 %1189  ;;  %v1192_v31 = vpop.xlane.xlu0 %1191  ;;  %2723 = vmatprep.subr.bf16.mxu0 %v3123_v1 }
 0x51b   : > { %3223 = vpow2.f32 %v1233_v28  ;;  %v1210_v33 = vsub.f32 %v3870_v9, %v1190_v2  ;;  %v1211_v3 = vsub.f32 %v3873_v12, %v1192_v31  ;;  %v3110_v12 = vld [vmem:[#allocation5 + $0x324] ss:$8 sps:$4 sm:$0xff]  }
 0x51c   : > { %v3949_v6 = vpop.eup %3211  ;;  %3225 = vpow2.f32 %v1235_v23  ;;  %1836 = vmatprep.subr.bf16.mxu1 %v3110_v12 }
 0x51d   : > { %v3951_v26 = vpop.eup %3213  ;;  %v1237_v32 = vmul.f32 1.442695, %v1210_v33  ;;  %v1239_v41 = vmul.f32 1.442695, %v1211_v3  ;;  %1253 = vadd.xlane.f32.xlu1 %v3949_v6  ;;  %1837 = vmatpush2.bf16.msra.mxu1 %v3108_v43 }
 0x51e   : > { %1255 = vadd.xlane.f32.xlu0 %v3951_v26  ;;  %v1194_v25 = vpop.xlane.xlu1 %1193  ;;  %v1196_v24 = vpop.xlane.xlu0 %1195  ;;  %1838 = vmatprep.subr.bf16.mxu1 %v3113_v27 }
 0x51f   : > { %3227 = vpow2.f32 %v1237_v32  ;;  %v1212_v34 = vsub.f32 %v3878_v15, %v1194_v25  ;;  %v1213_v9 = vsub.f32 %v3881_v18, %v1196_v24  ;;  %2724 = vmatpush3.bf16.msra.mxu0 %v3124_v17 }
 0x520   : > { %v3957_v11 = vpop.eup %3215  ;;  %3229 = vpow2.f32 %v1239_v41  ;;  %2725 = vmatprep.subr.bf16.mxu0 %v3125_v51 }
 0x521   : > { %v3959_v8 = vpop.eup %3217  ;;  %v1241_v42 = vmul.f32 1.442695, %v1212_v34  ;;  %v1243_v35 = vmul.f32 1.442695, %v1213_v9  ;;  %1257 = vadd.xlane.f32.xlu1 %v3957_v11  ;;  %1839 = vmatpush2.bf16.msra.mxu1 %v3111_v5 }
 0x522   : > { %1259 = vadd.xlane.f32.xlu0 %v3959_v8  ;;  %v1198_v40 = vpop.xlane.xlu1 %1197  ;;  %1840 = vmatprep.subr.bf16.mxu1 %v3116_v45 }
 0x523   : > { %3231 = vpow2.f32 %v1241_v42  ;;  %v1214_v15 = vsub.f32 %v3885_v21, %v1198_v40  ;;  %2726 = vmatpush3.bf16.msra.mxu0 %v3126_v7 }
 0x524   : > { %v3964_v18 = vpop.eup %3219  ;;  %3233 = vpow2.f32 %v1243_v35  ;;  %2727 = vmatprep.subr.bf16.mxu0 %v3127_v54 }
 0x525   : > { %v3966_v30 = vpop.eup %3221  ;;  %v1245_v44 = vmul.f32 1.442695, %v1214_v15  ;;  %1261 = vadd.xlane.f32.xlu1 %v3964_v18  ;;  %1841 = vmatpush2.bf16.msra.mxu1 %v3114_v14 }
 0x526   : > { %1263 = vadd.xlane.f32.xlu0 %v3966_v30 }
 0x527   : > { %3235 = vpow2.f32 %v1245_v44  ;;  %2728 = vmatpush3.bf16.msra.mxu0 %v3128_v13 }
 0x528   : > { %v3970_v49 = vpop.eup %3223  ;;  %2729 = vmatprep.subr.bf16.mxu0 %v3129_v37 }
 0x529   : > { %v3972_v21 = vpop.eup %3225  ;;  %1265 = vadd.xlane.f32.xlu1 %v3970_v49 }
 0x52a   : > { %1267 = vadd.xlane.f32.xlu0 %v3972_v21 }
 0x52b   : > { %2730 = vmatpush3.bf16.msra.mxu0 %v3130_v55 }
 0x52c   : > { %v3976_v39 = vpop.eup %3227 }
 0x52d   : > { %v3978_v4 = vpop.eup %3229  ;;  %1269 = vadd.xlane.f32.xlu1 %v3976_v39 }
 0x52e   : > { %1271 = vadd.xlane.f32.xlu0 %v3978_v4 }
 0x530   : > { %v3982_v53 = vpop.eup %3231 }
 0x531   : > { %v3984_v57 = vpop.eup %3233  ;;  %1273 = vadd.xlane.f32.xlu1 %v3982_v53 }
 0x532   : > { %1275 = vadd.xlane.f32.xlu0 %v3984_v57 }
 0x534   : > { %v3988_v48 = vpop.eup %3235 }
 0x535   : > { %1277 = vadd.xlane.f32.xlu1 %v3988_v48 }
 0x59f   : > { %v1478_v58 = vpop.f32.mrf.mxu0 }
 0x5a0   : > { %v1479_v22 = vadd.f32 %v1478_v58, %v3995_v50 }
 0x5a1   : > { %v1480_v16 = vpop.f32.mrf.mxu0 }
 0x5a2   : > { %v1481_v19 = vadd.f32 %v1480_v16, %v3992_v60  ;;  %v1557_v32 = vmax.f32 %v1479_v22, 0.0 }
 0x5a3   : > { %v1482_v38 = vpop.f32.mrf.mxu0 }
 0x5a4   : > { %v1483_v63 = vadd.f32 %v1482_v38, %v3995_v50  ;;  %v1558_v33 = vmax.f32 %v1481_v19, 0.0 }
 0x5a5   : > { %v1484_v28 = vpop.f32.mrf.mxu0 }
 0x5a6   : > { %v1485_v23 = vadd.f32 %v1484_v28, %v3992_v60  ;;  %v1559_v2 = vmax.f32 %v1483_v63, 0.0 }
 0x5a7   : > { %v1488_v31 = vpop.f32.mrf.mxu0 }
 0x5a8   : > { %v1560_v3 = vmax.f32 %v1485_v23, 0.0  ;;  %v1589_v24 = vpack.c.bf16 %v1559_v2, %v1557_v32  ;;  %v1489_v42 = vadd.f32 %v1488_v31, %v3995_v50 }
 0x5a9   : > { %v1490_v41 = vpop.f32.mrf.mxu0 }
 0x5aa   : > { %v1590_v25 = vpack.c.bf16 %v1560_v3, %v1558_v33  ;;  %v1491_v9 = vadd.f32 %v1490_v41, %v3992_v60  ;;  %v1561_v5 = vmax.f32 %v1489_v42, 0.0 }
 0x5ab   : > { %v1492_v34 = vpop.f32.mrf.mxu0 }
 0x5ac   : > { %v1493_v12 = vadd.f32 %v1492_v34, %v3995_v50  ;;  %1842 = vmatprep.mubr.bf16.mxu1 %v1590_v25  ;;  %v1562_v27 = vmax.f32 %v1491_v9, 0.0 }
 0x5ad   : > { %v1494_v35 = vpop.f32.mrf.mxu0  ;;  %1843 = vmatmul.mubr.bf16.vlgmr.msra.gmra.mxu1 %v1589_v24 }
 0x5ae   : > { %v1495_v43 = vadd.f32 %v1494_v35, %v3992_v60  ;;  %v1563_v40 = vmax.f32 %v1493_v12, 0.0 }
 0x5af   : > { %v1498_v15 = vpop.f32.mrf.mxu0 }
 0x5b0   : > { %v1564_v44 = vmax.f32 %v1495_v43, 0.0  ;;  %v1591_v56 = vpack.c.bf16 %v1563_v40, %v1561_v5  ;;  %v1499_v52 = vadd.f32 %v1498_v15, %v3995_v50 }
 0x5b1   : > { %v1500_v45 = vpop.f32.mrf.mxu0 }
 0x5b2   : > { %v1592_v14 = vpack.c.bf16 %v1564_v44, %v1562_v27  ;;  %v1501_v62 = vadd.f32 %v1500_v45, %v3992_v60  ;;  %v1565_v13 = vmax.f32 %v1499_v52, 0.0 }
 0x5b3   : > { %v1502_v36 = vpop.f32.mrf.mxu0 }
 0x5b4   : > { %v1503_v47 = vadd.f32 %v1502_v36, %v3995_v50  ;;  %1852 = vmatprep.mubr.bf16.mxu1 %v1592_v14  ;;  %v1566_v7 = vmax.f32 %v1501_v62, 0.0 }
 0x5b5   : > { %v1504_v59 = vpop.f32.mrf.mxu0  ;;  %1853 = vmatmul.mubr.bf16.gmra.mxu1 %v1591_v56 }
 0x5b6   : > { %v1505_v1 = vadd.f32 %v1504_v59, %v3992_v60  ;;  %v1567_v17 = vmax.f32 %v1503_v47, 0.0 }
 0x5b7   : > { %v1508_v51 = vpop.f32.mrf.mxu0 }
 0x5b8   : > { %v1568_v54 = vmax.f32 %v1505_v1, 0.0  ;;  %v1593_v20 = vpack.c.bf16 %v1567_v17, %v1565_v13  ;;  %v1509_v19 = vadd.f32 %v1508_v51, %v3995_v50 }
 0x5b9   : > { %v1510_v37 = vpop.f32.mrf.mxu0 }
 0x5ba   : > { %v1594_v55 = vpack.c.bf16 %v1568_v54, %v1566_v7  ;;  %v1511_v16 = vadd.f32 %v1510_v37, %v3992_v60  ;;  %v1569_v33 = vmax.f32 %v1509_v19, 0.0 }
 0x5bb   : > { %v1512_v58 = vpop.f32.mrf.mxu0 }
 0x5bc   : > { %v1513_v38 = vadd.f32 %v1512_v58, %v3995_v50  ;;  %1862 = vmatprep.mubr.bf16.mxu1 %v1594_v55  ;;  %v1570_v2 = vmax.f32 %v1511_v16, 0.0 }
 0x5bd   : > { %v1514_v63 = vpop.f32.mrf.mxu0  ;;  %1863 = vmatmul.mubr.bf16.gmra.mxu1 %v1593_v20 }
 0x5be   : > { %v1515_v22 = vadd.f32 %v1514_v63, %v3992_v60  ;;  %v1571_v28 = vmax.f32 %v1513_v38, 0.0 }
 0x5bf   : > { %v1518_v23 = vpop.f32.mrf.mxu0 }
 0x5c0   : > { %v1572_v31 = vmax.f32 %v1515_v22, 0.0  ;;  %v1595_v41 = vpack.c.bf16 %v1571_v28, %v1569_v33  ;;  %v1519_v9 = vadd.f32 %v1518_v23, %v3995_v50 }
 0x5c1   : > { %v1520_v3 = vpop.f32.mrf.mxu0 }
 0x5c2   : > { %v1596_v32 = vpack.c.bf16 %v1572_v31, %v1570_v2  ;;  %v1521_v24 = vadd.f32 %v1520_v3, %v3992_v60  ;;  %v1573_v27 = vmax.f32 %v1519_v9, 0.0 }
 0x5c3   : > { %v1522_v25 = vpop.f32.mrf.mxu0 }
 0x5c4   : > { %v1523_v34 = vadd.f32 %v1522_v25, %v3995_v50  ;;  %1872 = vmatprep.mubr.bf16.mxu1 %v1596_v32  ;;  %v1574_v40 = vmax.f32 %v1521_v24, 0.0 }
 0x5c5   : > { %v1524_v12 = vpop.f32.mrf.mxu0  ;;  %1873 = vmatmul.mubr.bf16.gmra.mxu1 %v1595_v41 }
 0x5c6   : > { %v1525_v42 = vadd.f32 %v1524_v12, %v3992_v60  ;;  %v1575_v35 = vmax.f32 %v1523_v34, 0.0 }
 0x5c7   : > { %v1528_v43 = vpop.f32.mrf.mxu0 }
 0x5c8   : > { %v1576_v15 = vmax.f32 %v1525_v42, 0.0  ;;  %v1597_v45 = vpack.c.bf16 %v1575_v35, %v1573_v27  ;;  %v1529_v62 = vadd.f32 %v1528_v43, %v3995_v50  ;;  %v3131_v27 = vld [vmem:[#allocation5 + $0x400] ss:$8 sps:$4 sm:$0xff]  }
 0x5c9   : > { %v1530_v44 = vpop.f32.mrf.mxu0  ;;  %2731 = vmatprep.subr.bf16.mxu0 %v3131_v27 }
 0x5ca   : > { %v1598_v5 = vpack.c.bf16 %v1576_v15, %v1574_v40  ;;  %v1531_v56 = vadd.f32 %v1530_v44, %v3992_v60  ;;  %v1577_v7 = vmax.f32 %v1529_v62, 0.0  ;;  %v3132_v44 = vld [vmem:[#allocation5 + $0x380] ss:$8 sps:$4 sm:$0xff]  }
 0x5cb   : > { %v1532_v14 = vpop.f32.mrf.mxu0  ;;  %2732 = vmatpush3.bf16.msra.mxu0 %v3132_v44 }
 0x5cc   : > { %v1533_v36 = vadd.f32 %v1532_v14, %v3995_v50  ;;  %1882 = vmatprep.mubr.bf16.mxu1 %v1598_v5  ;;  %v1578_v17 = vmax.f32 %v1531_v56, 0.0  ;;  %v3133_v5 = vld [vmem:[#allocation5 + $0x4f0] ss:$8 sps:$4 sm:$0xff]  }
 0x5cd   : > { %v1534_v47 = vpop.f32.mrf.mxu0  ;;  %1883 = vmatmul.mubr.bf16.gmra.mxu1 %v1597_v45  ;;  %v3134_v45 = vld [vmem:[#allocation5 + $0x4e0] ss:$8 sps:$4 sm:$0xff]   ;;  %2893 = vmatprep.subr.bf16.mxu1 %v3133_v5 }
 0x5ce   : > { %v1535_v52 = vadd.f32 %v1534_v47, %v3992_v60  ;;  %v1579_v59 = vmax.f32 %v1533_v36, 0.0  ;;  %2894 = vmatpush3.bf16.msra.mxu1 %v3133_v5 }
 0x5cf   : > { %v1538_v1 = vpop.f32.mrf.mxu0  ;;  %2895 = vmatprep.subr.bf16.mxu1 %v3134_v45 }
 0x5d0   : > { %v1580_v51 = vmax.f32 %v1535_v52, 0.0  ;;  %v1599_v37 = vpack.c.bf16 %v1579_v59, %v1577_v7  ;;  %v1539_v16 = vadd.f32 %v1538_v1, %v3995_v50 }
 0x5d1   : > { %v1540_v54 = vpop.f32.mrf.mxu0 }
 0x5d2   : > { %v1600_v13 = vpack.c.bf16 %v1580_v51, %v1578_v17  ;;  %v1541_v20 = vadd.f32 %v1540_v54, %v3992_v60  ;;  %v1581_v2 = vmax.f32 %v1539_v16, 0.0  ;;  %2896 = vmatpush3.bf16.msra.mxu1 %v3134_v45 }
 0x5d3   : > { %v1542_v55 = vpop.f32.mrf.mxu0 }
 0x5d4   : > { %v1543_v58 = vadd.f32 %v1542_v55, %v3995_v50  ;;  %1892 = vmatprep.mubr.bf16.mxu1 %v1600_v13  ;;  %v1582_v28 = vmax.f32 %v1541_v20, 0.0 }
 0x5d5   : > { %v1544_v38 = vpop.f32.mrf.mxu0  ;;  %1893 = vmatmul.mubr.bf16.gmra.mxu1 %v1599_v37 }
 0x5d6   : > { %v1545_v19 = vadd.f32 %v1544_v38, %v3992_v60  ;;  %v1583_v63 = vmax.f32 %v1543_v58, 0.0 }
 0x5d7   : > { %v1548_v22 = vpop.f32.mrf.mxu0 }
 0x5d8   : > { %v1584_v23 = vmax.f32 %v1545_v19, 0.0  ;;  %v1601_v3 = vpack.c.bf16 %v1583_v63, %v1581_v2  ;;  %v1549_v24 = vadd.f32 %v1548_v22, %v3995_v50 }
 0x5d9   : > { %v1550_v31 = vpop.f32.mrf.mxu0 }
 0x5da   : > { %v1602_v33 = vpack.c.bf16 %v1584_v23, %v1582_v28  ;;  %v1551_v41 = vadd.f32 %v1550_v31, %v3992_v60  ;;  %v1585_v43 = vmax.f32 %v1549_v24, 0.0 }
 0x5db   : > { %v1552_v32 = vpop.f32.mrf.mxu0 }
 0x5dc   : > { %v1553_v25 = vadd.f32 %v1552_v32, %v3995_v50  ;;  %1902 = vmatprep.mubr.bf16.mxu1 %v1602_v33  ;;  %v1586_v42 = vmax.f32 %v1551_v41, 0.0  ;;  %v3135_v50 = vld [vmem:[#allocation5 + $0x4d0] ss:$8 sps:$4 sm:$0xff]  }
 0x5dd   : > { %v1554_v34 = vpop.f32.mrf.mxu0  ;;  %1903 = vmatmul.mubr.bf16.gmra.mxu1 %v1601_v3  ;;  %2897 = vmatprep.subr.bf16.mxu1 %v3135_v50 }
 0x5de   : > { %v1555_v9 = vadd.f32 %v1554_v34, %v3992_v60  ;;  %v1587_v12 = vmax.f32 %v1553_v25, 0.0  ;;  %2898 = vmatpush3.bf16.msra.mxu1 %v3135_v50  ;;  %v1638_v60 = vld [vmem:[#allocation7 + $0x5] ss:$8 sm:$0x3] }
 0x5df   : > { %v4030_v56 = vrot.slane %v1638_v60, %v3812_v29  ;;  %v4033_v36 = vrot.slane %v1638_v60, %v3672_v46 }
 0x5e0   : > { %v1588_v35 = vmax.f32 %v1555_v9, 0.0  ;;  %v1603_v15 = vpack.c.bf16 %v1587_v12, %v1585_v43 }
 0x5e2   : > { %v1604_v40 = vpack.c.bf16 %v1588_v35, %v1586_v42 }
 0x5e4   : > { %1912 = vmatprep.mubr.bf16.mxu1 %v1604_v40 }
 0x5e5   : > { %1913 = vmatmul.mubr.bf16.gmra.mxu1 %v1603_v15 }
 0x66d   : > { %v1844_v14 = vpop.f32.mrf.mxu1 }
 0x66e   : > { %v1845_v1 = vadd.f32 %v1844_v14, %v4033_v36 }
 0x66f   : > { %v1846_v62 = vpop.f32.mrf.mxu1 }
 0x670   : > { %v1847_v52 = vadd.f32 %v1846_v62, %v4030_v56  ;;  %v1923_v29 = vmax.f32 %v1845_v1, 0.0 }
 0x671   : > { %v1848_v47 = vpop.f32.mrf.mxu1 }
 0x672   : > { %v1849_v59 = vadd.f32 %v1848_v47, %v4033_v36  ;;  %v1924_v13 = vmax.f32 %v1847_v52, 0.0 }
 0x673   : > { %v1850_v17 = vpop.f32.mrf.mxu1 }
 0x674   : > { %v1851_v51 = vadd.f32 %v1850_v17, %v4030_v56  ;;  %v1925_v7 = vmax.f32 %v1849_v59, 0.0 }
 0x675   : > { %v1854_v54 = vpop.f32.mrf.mxu1 }
 0x676   : > { %v1926_v37 = vmax.f32 %v1851_v51, 0.0  ;;  %v1955_v46 = vpack.c.bf16 %v1925_v7, %v1923_v29  ;;  %v1855_v19 = vadd.f32 %v1854_v54, %v4033_v36 }
 0x677   : > { %v1856_v55 = vpop.f32.mrf.mxu1 }
 0x678   : > { %v1956_v20 = vpack.c.bf16 %v1926_v37, %v1924_v13  ;;  %v1857_v16 = vadd.f32 %v1856_v55, %v4030_v56  ;;  %v1927_v33 = vmax.f32 %v1855_v19, 0.0 }
 0x679   : > { %v1858_v58 = vpop.f32.mrf.mxu1 }
 0x67a   : > { %v1859_v38 = vadd.f32 %v1858_v58, %v4033_v36  ;;  %2132 = vmatprep.mubr.bf16.mxu0 %v1956_v20  ;;  %v1928_v2 = vmax.f32 %v1857_v16, 0.0 }
 0x67b   : > { %v1860_v63 = vpop.f32.mrf.mxu1  ;;  %2133 = vmatmul.mubr.bf16.vlgmr.msra.gmra.mxu0 %v1955_v46 }
 0x67c   : > { %v1861_v22 = vadd.f32 %v1860_v63, %v4030_v56  ;;  %v1929_v28 = vmax.f32 %v1859_v38, 0.0 }
 0x67d   : > { %v1864_v23 = vpop.f32.mrf.mxu1 }
 0x67e   : > { %v1930_v31 = vmax.f32 %v1861_v22, 0.0  ;;  %v1957_v41 = vpack.c.bf16 %v1929_v28, %v1927_v33  ;;  %v1865_v9 = vadd.f32 %v1864_v23, %v4033_v36 }
 0x67f   : > { %v1866_v3 = vpop.f32.mrf.mxu1 }
 0x680   : > { %v1958_v32 = vpack.c.bf16 %v1930_v31, %v1928_v2  ;;  %v1867_v24 = vadd.f32 %v1866_v3, %v4030_v56  ;;  %v1931_v27 = vmax.f32 %v1865_v9, 0.0 }
 0x681   : > { %v1868_v25 = vpop.f32.mrf.mxu1 }
 0x682   : > { %v1869_v34 = vadd.f32 %v1868_v25, %v4033_v36  ;;  %2140 = vmatprep.mubr.bf16.mxu0 %v1958_v32  ;;  %v1932_v40 = vmax.f32 %v1867_v24, 0.0 }
 0x683   : > { %v1870_v12 = vpop.f32.mrf.mxu1  ;;  %2141 = vmatmul.mubr.bf16.gmra.mxu0 %v1957_v41 }
 0x684   : > { %v1871_v42 = vadd.f32 %v1870_v12, %v4030_v56  ;;  %v1933_v35 = vmax.f32 %v1869_v34, 0.0 }
 0x685   : > { %v1874_v43 = vpop.f32.mrf.mxu1 }
 0x686   : > { %v1934_v15 = vmax.f32 %v1871_v42, 0.0  ;;  %v1959_v45 = vpack.c.bf16 %v1933_v35, %v1931_v27  ;;  %v1875_v62 = vadd.f32 %v1874_v43, %v4033_v36 }
 0x687   : > { %v1876_v44 = vpop.f32.mrf.mxu1 }
 0x688   : > { %v1960_v5 = vpack.c.bf16 %v1934_v15, %v1932_v40  ;;  %v1877_v60 = vadd.f32 %v1876_v44, %v4030_v56  ;;  %v1935_v7 = vmax.f32 %v1875_v62, 0.0 }
 0x689   : > { %v1878_v50 = vpop.f32.mrf.mxu1 }
 0x68a   : > { %v1879_v14 = vadd.f32 %v1878_v50, %v4033_v36  ;;  %2148 = vmatprep.mubr.bf16.mxu0 %v1960_v5  ;;  %v1936_v17 = vmax.f32 %v1877_v60, 0.0 }
 0x68b   : > { %v1880_v47 = vpop.f32.mrf.mxu1  ;;  %2149 = vmatmul.mubr.bf16.gmra.mxu0 %v1959_v45 }
 0x68c   : > { %v1881_v52 = vadd.f32 %v1880_v47, %v4030_v56  ;;  %v1937_v59 = vmax.f32 %v1879_v14, 0.0 }
 0x68d   : > { %v1884_v1 = vpop.f32.mrf.mxu1 }
 0x68e   : > { %v1938_v51 = vmax.f32 %v1881_v52, 0.0  ;;  %v1961_v37 = vpack.c.bf16 %v1937_v59, %v1935_v7  ;;  %v1885_v46 = vadd.f32 %v1884_v1, %v4033_v36 }
 0x68f   : > { %v1886_v54 = vpop.f32.mrf.mxu1 }
 0x690   : > { %v1962_v13 = vpack.c.bf16 %v1938_v51, %v1936_v17  ;;  %v1887_v55 = vadd.f32 %v1886_v54, %v4030_v56  ;;  %v1939_v28 = vmax.f32 %v1885_v46, 0.0 }
 0x691   : > { %v1888_v29 = vpop.f32.mrf.mxu1 }
 0x692   : > { %v1889_v20 = vadd.f32 %v1888_v29, %v4033_v36  ;;  %2156 = vmatprep.mubr.bf16.mxu0 %v1962_v13  ;;  %v1940_v63 = vmax.f32 %v1887_v55, 0.0 }
 0x693   : > { %v1890_v58 = vpop.f32.mrf.mxu1  ;;  %2157 = vmatmul.mubr.bf16.gmra.mxu0 %v1961_v37 }
 0x694   : > { %v1891_v16 = vadd.f32 %v1890_v58, %v4030_v56  ;;  %v1941_v38 = vmax.f32 %v1889_v20, 0.0 }
 0x695   : > { %v1894_v19 = vpop.f32.mrf.mxu1 }
 0x696   : > { %v1942_v22 = vmax.f32 %v1891_v16, 0.0  ;;  %v1963_v31 = vpack.c.bf16 %v1941_v38, %v1939_v28  ;;  %v1895_v41 = vadd.f32 %v1894_v19, %v4033_v36  ;;  %v3138_v28 = vld [vmem:[#allocation5 + $0x4a0] ss:$8 sps:$4 sm:$0xff]  }
 0x697   : > { %v1896_v23 = vpop.f32.mrf.mxu1 }
 0x698   : > { %v1964_v2 = vpack.c.bf16 %v1942_v22, %v1940_v63  ;;  %v1897_v3 = vadd.f32 %v1896_v23, %v4030_v56  ;;  %v1943_v35 = vmax.f32 %v1895_v41, 0.0  ;;  %v3136_v63 = vld [vmem:[#allocation5 + $0x4c0] ss:$8 sps:$4 sm:$0xff]   ;;  %v3137_v22 = vld [vmem:[#allocation5 + $0x4b0] ss:$8 sps:$4 sm:$0xff]  }
 0x699   : > { %v1898_v33 = vpop.f32.mrf.mxu1  ;;  %2899 = vmatprep.subr.bf16.mxu1 %v3136_v63 }
 0x69a   : > { %v1899_v32 = vadd.f32 %v1898_v33, %v4033_v36  ;;  %2164 = vmatprep.mubr.bf16.mxu0 %v1964_v2  ;;  %v1944_v12 = vmax.f32 %v1897_v3, 0.0  ;;  %2900 = vmatpush3.bf16.msra.mxu1 %v3136_v63  ;;  %v4067_v33 = vld [vmem:[#allocation7 + $0x6] ss:$0 sm:$0xff] }
 0x69b   : > { %v1900_v25 = vpop.f32.mrf.mxu1  ;;  %2165 = vmatmul.mubr.bf16.gmra.mxu0 %v1963_v31  ;;  %2901 = vmatprep.subr.bf16.mxu1 %v3137_v22 }
 0x69c   : > { %v1901_v24 = vadd.f32 %v1900_v25, %v4030_v56  ;;  %v1945_v34 = vmax.f32 %v1899_v32, 0.0 }
 0x69d   : > { %v1904_v9 = vpop.f32.mrf.mxu1 }
 0x69e   : > { %v1946_v42 = vmax.f32 %v1901_v24, 0.0  ;;  %v1965_v15 = vpack.c.bf16 %v1945_v34, %v1943_v35  ;;  %v1905_v45 = vadd.f32 %v1904_v9, %v4033_v36  ;;  %2902 = vmatpush3.bf16.msra.mxu1 %v3137_v22 }
 0x69f   : > { %v1906_v43 = vpop.f32.mrf.mxu1  ;;  %2903 = vmatprep.subr.bf16.mxu1 %v3138_v28 }
 0x6a0   : > { %v1966_v40 = vpack.c.bf16 %v1946_v42, %v1944_v12  ;;  %v1907_v44 = vadd.f32 %v1906_v43, %v4030_v56  ;;  %v1947_v59 = vmax.f32 %v1905_v45, 0.0 }
 0x6a1   : > { %v1908_v27 = vpop.f32.mrf.mxu1 }
 0x6a2   : > { %v1909_v5 = vadd.f32 %v1908_v27, %v4033_v36  ;;  %2172 = vmatprep.mubr.bf16.mxu0 %v1966_v40  ;;  %v1948_v47 = vmax.f32 %v1907_v44, 0.0  ;;  %2904 = vmatpush3.bf16.msra.mxu1 %v3138_v28 }
 0x6a3   : > { %v1910_v50 = vpop.f32.mrf.mxu1  ;;  %2173 = vmatmul.mubr.bf16.gmra.mxu0 %v1965_v15 }
 0x6a4   : > { %v1911_v60 = vadd.f32 %v1910_v50, %v4030_v56  ;;  %v1949_v14 = vmax.f32 %v1909_v5, 0.0 }
 0x6a5   : > { %v1914_v62 = vpop.f32.mrf.mxu1 }
 0x6a6   : > { %v1950_v52 = vmax.f32 %v1911_v60, 0.0  ;;  %v1967_v51 = vpack.c.bf16 %v1949_v14, %v1947_v59  ;;  %v1915_v37 = vadd.f32 %v1914_v62, %v4033_v36 }
 0x6a7   : > { %v1916_v1 = vpop.f32.mrf.mxu1 }
 0x6a8   : > { %v1968_v17 = vpack.c.bf16 %v1950_v52, %v1948_v47  ;;  %v1917_v54 = vadd.f32 %v1916_v1, %v4030_v56  ;;  %v1951_v16 = vmax.f32 %v1915_v37, 0.0 }
 0x6a9   : > { %v1918_v7 = vpop.f32.mrf.mxu1 }
 0x6aa   : > { %v1919_v13 = vadd.f32 %v1918_v7, %v4033_v36  ;;  %2180 = vmatprep.mubr.bf16.mxu0 %v1968_v17  ;;  %v1952_v46 = vmax.f32 %v1917_v54, 0.0  ;;  %v3139_v36 = vld [vmem:[#allocation5 + $0x490] ss:$8 sps:$4 sm:$0xff]  }
 0x6ab   : > { %v1920_v29 = vpop.f32.mrf.mxu1  ;;  %2181 = vmatmul.mubr.bf16.gmra.mxu0 %v1967_v51  ;;  %2905 = vmatprep.subr.bf16.mxu1 %v3139_v36 }
 0x6ac   : > { %v1921_v55 = vadd.f32 %v1920_v29, %v4030_v56  ;;  %v1953_v20 = vmax.f32 %v1919_v13, 0.0  ;;  %2906 = vmatpush3.bf16.msra.mxu1 %v3139_v36  ;;  %v3140_v56 = vld [vmem:[#allocation5 + $0x480] ss:$8 sps:$4 sm:$0xff]  }
 0x6ad   : > { %2907 = vmatprep.subr.bf16.mxu1 %v3140_v56 }
 0x6ae   : > { %v1954_v58 = vmax.f32 %v1921_v55, 0.0  ;;  %v1969_v19 = vpack.c.bf16 %v1953_v20, %v1951_v16 }
 0x6b0   : > { %v1970_v38 = vpack.c.bf16 %v1954_v58, %v1952_v46  ;;  %2908 = vmatpush3.bf16.msra.mxu1 %v3140_v56 }
 0x6b2   : > { %2188 = vmatprep.mubr.bf16.mxu0 %v1970_v38 }
 0x6b3   : > { %2189 = vmatmul.mubr.bf16.gmra.mxu0 %v1969_v19 }
 0x73b   : > { %v2733_v23 = vpop.f32.mrf.mxu0 }
 0x73d   : > { %v2734_v2 = vpop.f32.mrf.mxu0 }
 0x73e   : > { %v2735_v31 = vadd.f32 %v2734_v2, %v2733_v23 }
 0x73f   : > { %v2736_v3 = vpop.f32.mrf.mxu0 }
 0x740   : > { %v2135_v41 = vadd.f32 %v2735_v31, %v4067_v33 }
 0x741   : > { %v2737_v32 = vpop.f32.mrf.mxu0 }
 0x742   : > { %v2738_v25 = vadd.f32 %v2737_v32, %v2736_v3  ;;  %v2197_v12 = vmax.f32 %v2135_v41, 0.0 }
 0x743   : > { %v2739_v24 = vpop.f32.mrf.mxu0 }
 0x744   : > { %v2138_v34 = vadd.f32 %v2738_v25, %v4067_v33 }
 0x745   : > { %v2740_v9 = vpop.f32.mrf.mxu0 }
 0x746   : > { %v2198_v42 = vmax.f32 %v2138_v34, 0.0  ;;  %v2741_v35 = vadd.f32 %v2740_v9, %v2739_v24 }
 0x747   : > { %v2742_v43 = vpop.f32.mrf.mxu0 }
 0x748   : > { %v2213_v40 = vpack.c.bf16 %v2198_v42, %v2197_v12  ;;  %v2143_v27 = vadd.f32 %v2741_v35, %v4067_v33 }
 0x749   : > { %v2743_v15 = vpop.f32.mrf.mxu0 }
 0x74a   : > { %v2744_v44 = vadd.f32 %v2743_v15, %v2742_v43  ;;  %2909 = vmatprep.mubr.bf16.mxu1 %v2213_v40  ;;  %v2199_v60 = vmax.f32 %v2143_v27, 0.0 }
 0x74b   : > { %v2745_v5 = vpop.f32.mrf.mxu0 }
 0x74c   : > { %v2146_v45 = vadd.f32 %v2744_v44, %v4067_v33 }
 0x74d   : > { %v2746_v50 = vpop.f32.mrf.mxu0 }
 0x74e   : > { %v2200_v14 = vmax.f32 %v2146_v45, 0.0  ;;  %v2747_v62 = vadd.f32 %v2746_v50, %v2745_v5 }
 0x74f   : > { %v2748_v47 = vpop.f32.mrf.mxu0 }
 0x750   : > { %v2214_v52 = vpack.c.bf16 %v2200_v14, %v2199_v60  ;;  %v2151_v1 = vadd.f32 %v2747_v62, %v4067_v33 }
 0x751   : > { %v2749_v59 = vpop.f32.mrf.mxu0 }
 0x752   : > { %v2750_v17 = vadd.f32 %v2749_v59, %v2748_v47  ;;  %2910 = vmatmul.mubr.bf16.vlgmr.msra.gmra.mxu1 %v2214_v52  ;;  %v2201_v13 = vmax.f32 %v2151_v1, 0.0 }
 0x753   : > { %v2751_v51 = vpop.f32.mrf.mxu0 }
 0x754   : > { %v2154_v7 = vadd.f32 %v2750_v17, %v4067_v33 }
 0x755   : > { %v2752_v54 = vpop.f32.mrf.mxu0 }
 0x756   : > { %v2202_v37 = vmax.f32 %v2154_v7, 0.0  ;;  %v2753_v29 = vadd.f32 %v2752_v54, %v2751_v51 }
 0x757   : > { %v2754_v55 = vpop.f32.mrf.mxu0 }
 0x758   : > { %v2215_v20 = vpack.c.bf16 %v2202_v37, %v2201_v13  ;;  %v2159_v58 = vadd.f32 %v2753_v29, %v4067_v33 }
 0x759   : > { %v2755_v46 = vpop.f32.mrf.mxu0 }
 0x75a   : > { %v2756_v16 = vadd.f32 %v2755_v46, %v2754_v55  ;;  %2913 = vmatprep.mubr.bf16.mxu1 %v2215_v20  ;;  %v2203_v22 = vmax.f32 %v2159_v58, 0.0 }
 0x75b   : > { %v2757_v38 = vpop.f32.mrf.mxu0 }
 0x75c   : > { %v2162_v19 = vadd.f32 %v2756_v16, %v4067_v33 }
 0x75d   : > { %v2758_v63 = vpop.f32.mrf.mxu0 }
 0x75e   : > { %v2204_v28 = vmax.f32 %v2162_v19, 0.0  ;;  %v2759_v36 = vadd.f32 %v2758_v63, %v2757_v38  ;;  %v1248_v19 = vpop.xlane.xlu0 %1247  ;;  %v1250_v63 = vpop.xlane.xlu1 %1249 }
 0x75f   : > { %v2760_v56 = vpop.f32.mrf.mxu0 }
 0x760   : > { %v2216_v23 = vpack.c.bf16 %v2204_v28, %v2203_v22  ;;  %v2167_v31 = vadd.f32 %v2759_v36, %v4067_v33  ;;  %v4085_v28 = vld [vmem:[#allocation7 + $0x7] ss:$0 sm:$0xff] }
 0x761   : > { %v2761_v2 = vpop.f32.mrf.mxu0 }
 0x762   : > { %v2762_v3 = vadd.f32 %v2761_v2, %v2760_v56  ;;  %2914 = vmatmul.mubr.bf16.gmra.mxu1 %v2216_v23  ;;  %v2205_v24 = vmax.f32 %v2167_v31, 0.0  ;;  %v1252_v22 = vpop.xlane.xlu0 %1251  ;;  %v1254_v36 = vpop.xlane.xlu1 %1253 }
 0x763   : > { %v2763_v32 = vpop.f32.mrf.mxu0  ;;  %3237 = vrcp.f32 %v1252_v22 }
 0x764   : > { %v2170_v41 = vadd.f32 %v2762_v3, %v4067_v33  ;;  %3239 = vrcp.f32 %v1248_v19 }
 0x765   : > { %v2764_v25 = vpop.f32.mrf.mxu0  ;;  %3241 = vrcp.f32 %v1254_v36 }
 0x766   : > { %v2206_v34 = vmax.f32 %v2170_v41, 0.0  ;;  %v2765_v9 = vadd.f32 %v2764_v25, %v2763_v32  ;;  %v1256_v32 = vpop.xlane.xlu0 %1255 }
 0x767   : > { %v2766_v12 = vpop.f32.mrf.mxu0 }
 0x768   : > { %v2217_v42 = vpack.c.bf16 %v2206_v34, %v2205_v24  ;;  %v2175_v43 = vadd.f32 %v2765_v9, %v4067_v33  ;;  %v1258_v24 = vpop.xlane.xlu1 %1257 }
 0x769   : > { %v2767_v35 = vpop.f32.mrf.mxu0 }
 0x76a   : > { %v2768_v40 = vadd.f32 %v2767_v35, %v2766_v12  ;;  %2917 = vmatprep.mubr.bf16.mxu1 %v2217_v42  ;;  %v2207_v5 = vmax.f32 %v2175_v43, 0.0  ;;  %v1260_v9 = vpop.xlane.xlu0 %1259 }
 0x76b   : > { %v2769_v15 = vpop.f32.mrf.mxu0 }
 0x76c   : > { %v2178_v27 = vadd.f32 %v2768_v40, %v4067_v33  ;;  %v1262_v43 = vpop.xlane.xlu1 %1261 }
 0x76d   : > { %v2770_v44 = vpop.f32.mrf.mxu0 }
 0x76e   : > { %v2208_v45 = vmax.f32 %v2178_v27, 0.0  ;;  %v2771_v50 = vadd.f32 %v2770_v44, %v2769_v15 }
 0x76f   : > { %v2772_v60 = vpop.f32.mrf.mxu0 }
 0x770   : > { %v2218_v14 = vpack.c.bf16 %v2208_v45, %v2207_v5  ;;  %v2183_v47 = vadd.f32 %v2771_v50, %v4067_v33  ;;  %v3238_v34 = vpop.eup %3237 }
 0x771   : > { %v2773_v62 = vpop.f32.mrf.mxu0  ;;  %v3240_v12 = vpop.eup %3239  ;;  %v1297_v35 = vmul.f32 %v3238_v34, %v3943_v0 }
 0x772   : > { %v2774_v52 = vadd.f32 %v2773_v62, %v2772_v60  ;;  %2918 = vmatmul.mubr.bf16.gmra.mxu1 %v2218_v14  ;;  %v2209_v51 = vmax.f32 %v2183_v47, 0.0  ;;  %v3242_v42 = vpop.eup %3241  ;;  %v1295_v44 = vmul.f32 %v3240_v12, %v3936_v10 }
 0x773   : > { %v2775_v59 = vpop.f32.mrf.mxu0  ;;  %v1298_v14 = vmul.f32 %v3242_v42, %v3949_v6 }
 0x774   : > { %v2186_v1 = vadd.f32 %v2774_v52, %v4067_v33 }
 0x775   : > { %v2776_v17 = vpop.f32.mrf.mxu0 }
 0x776   : > { %v2210_v7 = vmax.f32 %v2186_v1, 0.0  ;;  %v2777_v54 = vadd.f32 %v2776_v17, %v2775_v59  ;;  %v1264_v17 = vpop.xlane.xlu0 %1263 }
 0x777   : > { %v2778_v13 = vpop.f32.mrf.mxu0 }
 0x778   : > { %v2219_v37 = vpack.c.bf16 %v2210_v7, %v2209_v51  ;;  %v2191_v55 = vadd.f32 %v2777_v54, %v4067_v33 }
 0x779   : > { %v2779_v29 = vpop.f32.mrf.mxu0 }
 0x77a   : > { %v2780_v20 = vadd.f32 %v2779_v29, %v2778_v13  ;;  %2921 = vmatprep.mubr.bf16.mxu1 %v2219_v37  ;;  %v2211_v58 = vmax.f32 %v2191_v55, 0.0  ;;  %v1266_v13 = vpop.xlane.xlu1 %1265  ;;  %v1268_v29 = vpop.xlane.xlu0 %1267 }
 0x77c   : > { %v2194_v46 = vadd.f32 %v2780_v20, %v4067_v33 }
 0x77e   : > { %v2212_v16 = vmax.f32 %v2194_v46, 0.0  ;;  %v1270_v46 = vpop.xlane.xlu1 %1269 }
 0x780   : > { %v2220_v38 = vpack.c.bf16 %v2212_v16, %v2211_v58 }
 0x782   : > { %2922 = vmatmul.mubr.bf16.gmra.mxu1 %v2220_v38 }
 0x812   : > { %v2911_v56 = vpop.f32.mrf.mxu1 }
 0x813   : > { %v2329_v23 = vadd.f32 %v2911_v56, %v4085_v28 }
 0x814   : > { %v2320_v2 = vpop.f32.mrf.mxu1 }
 0x815   : > { %3243 = vtanh.f32 %v2329_v23  ;;  %v2321_v33 = vadd.f32 %v2320_v2, %v4085_v28 }
 0x816   : > { %3245 = vrcp.f32 %v1250_v63  ;;  %v2912_v31 = vpop.f32.mrf.mxu1 }
 0x817   : > { %3247 = vtanh.f32 %v2321_v33  ;;  %v2332_v3 = vadd.f32 %v2912_v31, %v4085_v28 }
 0x818   : > { %v2323_v41 = vpop.f32.mrf.mxu1 }
 0x819   : > { %3249 = vtanh.f32 %v2332_v3  ;;  %v2324_v25 = vadd.f32 %v2323_v41, %v4085_v28 }
 0x81b   : > { %3251 = vtanh.f32 %v2324_v25  ;;  %v1272_v25 = vpop.xlane.xlu0 %1271 }
 0x81c   : > { %3253 = vrcp.f32 %v1260_v9  ;;  %v1274_v9 = vpop.xlane.xlu1 %1273 }
 0x81d   : > { %3255 = vrcp.f32 %v1256_v32 }
 0x81e   : > { %3257 = vrcp.f32 %v1262_v43 }
 0x81f   : > { %v1276_v42 = vpop.xlane.xlu0 %1275 }
 0x822   : > { %v3244_v40 = vpop.eup %3243  ;;  %v2915_v15 = vpop.f32.mrf.mxu1 }
 0x823   : > { %v3246_v27 = vpop.eup %3245  ;;  %v2401_v5 = vmul.f32 %v3244_v40, %v1297_v35  ;;  %v2345_v45 = vadd.f32 %v2915_v15, %v4085_v28  ;;  %v1278_v40 = vpop.xlane.xlu1 %1277 }
 0x824   : > { %v3248_v50 = vpop.eup %3247  ;;  %v2336_v60 = vpop.f32.mrf.mxu1  ;;  %v1296_v52 = vmul.f32 %v3246_v27, %v3941_v61 }
 0x825   : > { %2417 = vst [vmem:[%s4097_s18 + $0x10] sm:$0xff] %v2401_v5  ;;  %v2399_v0 = vmul.f32 %v3248_v50, %v1295_v44  ;;  %3259 = vtanh.f32 %v2345_v45  ;;  %v2337_v10 = vadd.f32 %v2336_v60, %v4085_v28 }
 0x826   : > { %v3250_v62 = vpop.eup %3249  ;;  %3261 = vrcp.f32 %v1258_v24  ;;  %v2916_v47 = vpop.f32.mrf.mxu1 }
 0x827   : > { %2415 = vst [vmem:[%s4097_s18] sm:$0xff] %v2399_v0  ;;  %v2402_v59 = vmul.f32 %v3250_v62, %v1298_v14  ;;  %3263 = vtanh.f32 %v2337_v10  ;;  %v2348_v6 = vadd.f32 %v2916_v47, %v4085_v28 }
 0x828   : > { %v3252_v1 = vpop.eup %3251  ;;  %v2339_v51 = vpop.f32.mrf.mxu1 }
 0x829   : > { %2418 = vst [vmem:[%s4097_s18 + $0x18] sm:$0xff] %v2402_v59  ;;  %v2400_v7 = vmul.f32 %v3252_v1, %v1296_v52  ;;  %3265 = vtanh.f32 %v2348_v6  ;;  %v2340_v54 = vadd.f32 %v2339_v51, %v4085_v28  ;;  %v3254_v37 = vpop.eup %3253 }
 0x82a   : > { %v3256_v55 = vpop.eup %3255  ;;  %v1301_v20 = vmul.f32 %v3254_v37, %v3959_v8 }
 0x82b   : > { %2416 = vst [vmem:[%s4097_s18 + $0x8] sm:$0xff] %v2400_v7  ;;  %3267 = vtanh.f32 %v2340_v54  ;;  %v3258_v61 = vpop.eup %3257  ;;  %v1299_v19 = vmul.f32 %v3256_v55, %v3951_v26 }
 0x82c   : > { %3269 = vrcp.f32 %v1268_v29  ;;  %v1302_v23 = vmul.f32 %v3258_v61, %v3964_v18 }
 0x82d   : > { %3271 = vrcp.f32 %v1264_v17 }
 0x82e   : > { %3273 = vrcp.f32 %v1270_v46 }
 0x832   : > { %v3260_v58 = vpop.eup %3259  ;;  %v2919_v16 = vpop.f32.mrf.mxu1 }
 0x833   : > { %v3262_v38 = vpop.eup %3261  ;;  %v2405_v63 = vmul.f32 %v3260_v58, %v1301_v20  ;;  %v2361_v22 = vadd.f32 %v2919_v16, %v4085_v28 }
 0x834   : > { %v3264_v36 = vpop.eup %3263  ;;  %v2352_v56 = vpop.f32.mrf.mxu1  ;;  %v1300_v31 = vmul.f32 %v3262_v38, %v3957_v11 }
 0x835   : > { %2421 = vst [vmem:[%s4097_s18 + $0x30] sm:$0xff] %v2405_v63  ;;  %v2403_v8 = vmul.f32 %v3264_v36, %v1299_v19  ;;  %3275 = vtanh.f32 %v2361_v22  ;;  %v2353_v2 = vadd.f32 %v2352_v56, %v4085_v28 }
 0x836   : > { %v3266_v33 = vpop.eup %3265  ;;  %3277 = vrcp.f32 %v1266_v13  ;;  %v2920_v26 = vpop.f32.mrf.mxu1 }
 0x837   : > { %2419 = vst [vmem:[%s4097_s18 + $0x20] sm:$0xff] %v2403_v8  ;;  %v2406_v3 = vmul.f32 %v3266_v33, %v1302_v23  ;;  %3279 = vtanh.f32 %v2353_v2  ;;  %v2364_v32 = vadd.f32 %v2920_v26, %v4085_v28 }
 0x838   : > { %v3268_v41 = vpop.eup %3267  ;;  %v2355_v18 = vpop.f32.mrf.mxu1 }
 0x839   : > { %2422 = vst [vmem:[%s4097_s18 + $0x38] sm:$0xff] %v2406_v3  ;;  %v2404_v24 = vmul.f32 %v3268_v41, %v1300_v31  ;;  %3281 = vtanh.f32 %v2364_v32  ;;  %v2356_v34 = vadd.f32 %v2355_v18, %v4085_v28  ;;  %v3270_v12 = vpop.eup %3269 }
 0x83a   : > { %v3272_v35 = vpop.eup %3271  ;;  %v1305_v43 = vmul.f32 %v3270_v12, %v3972_v21 }
 0x83b   : > { %2420 = vst [vmem:[%s4097_s18 + $0x28] sm:$0xff] %v2404_v24  ;;  %3283 = vtanh.f32 %v2356_v34  ;;  %v3274_v11 = vpop.eup %3273  ;;  %v1303_v5 = vmul.f32 %v3272_v35, %v3966_v30 }
 0x83c   : > { %3285 = vrcp.f32 %v1276_v42  ;;  %v1306_v0 = vmul.f32 %v3274_v11, %v3976_v39 }
 0x83d   : > { %3287 = vrcp.f32 %v1272_v25 }
 0x83e   : > { %3289 = vrcp.f32 %v1278_v40 }
 0x842   : > { %v3276_v15 = vpop.eup %3275  ;;  %v2923_v27 = vpop.f32.mrf.mxu1 }
 0x843   : > { %v3278_v44 = vpop.eup %3277  ;;  %v2409_v45 = vmul.f32 %v3276_v15, %v1305_v43  ;;  %v2377_v50 = vadd.f32 %v2923_v27, %v4085_v28 }
 0x844   : > { %v3280_v60 = vpop.eup %3279  ;;  %v2368_v14 = vpop.f32.mrf.mxu1  ;;  %v1304_v47 = vmul.f32 %v3278_v44, %v3970_v49 }
 0x845   : > { %2425 = vst [vmem:[%s4097_s18 + $0x50] sm:$0xff] %v2409_v45  ;;  %v2407_v21 = vmul.f32 %v3280_v60, %v1303_v5  ;;  %3291 = vtanh.f32 %v2377_v50  ;;  %v2369_v10 = vadd.f32 %v2368_v14, %v4085_v28 }
 0x846   : > { %v3282_v62 = vpop.eup %3281  ;;  %3293 = vrcp.f32 %v1274_v9  ;;  %v2924_v30 = vpop.f32.mrf.mxu1 }
 0x847   : > { %2423 = vst [vmem:[%s4097_s18 + $0x40] sm:$0xff] %v2407_v21  ;;  %v2410_v52 = vmul.f32 %v3282_v62, %v1306_v0  ;;  %3295 = vtanh.f32 %v2369_v10  ;;  %v2380_v59 = vadd.f32 %v2924_v30, %v4085_v28 }
 0x848   : > { %v3284_v6 = vpop.eup %3283  ;;  %v2371_v1 = vpop.f32.mrf.mxu1 }
 0x849   : > { %2426 = vst [vmem:[%s4097_s18 + $0x58] sm:$0xff] %v2410_v52  ;;  %v2408_v39 = vmul.f32 %v3284_v6, %v1304_v47  ;;  %3297 = vtanh.f32 %v2380_v59  ;;  %v2372_v17 = vadd.f32 %v2371_v1, %v4085_v28  ;;  %v3286_v51 = vpop.eup %3285 }
 0x84a   : > { %v3288_v49 = vpop.eup %3287  ;;  %v1309_v54 = vmul.f32 %v3286_v51, %v3984_v57 }
 0x84b   : > { %2424 = vst [vmem:[%s4097_s18 + $0x48] sm:$0xff] %v2408_v39  ;;  %3299 = vtanh.f32 %v2372_v17  ;;  %v3290_v7 = vpop.eup %3289  ;;  %v1307_v29 = vmul.f32 %v3288_v49, %v3978_v4 }
 0x84c   : > { %v1310_v28 = vmul.f32 %v3290_v7, %v3988_v48 }
 0x852   : > { %v3292_v13 = vpop.eup %3291 }
 0x853   : > { %v3294_v37 = vpop.eup %3293  ;;  %v2413_v55 = vmul.f32 %v3292_v13, %v1309_v54 }
 0x854   : > { %v3296_v61 = vpop.eup %3295  ;;  %v1308_v58 = vmul.f32 %v3294_v37, %v3982_v53 }
 0x855   : > { %2429 = vst [vmem:[%s4097_s18 + $0x70] sm:$0xff] %v2413_v55  ;;  %v2411_v20 = vmul.f32 %v3296_v61, %v1307_v29 }
 0x856   : > { %v3298_v46 = vpop.eup %3297 }
 0x857   : > { %2427 = vst [vmem:[%s4097_s18 + $0x60] sm:$0xff] %v2411_v20  ;;  %v2414_v57 = vmul.f32 %v3298_v46, %v1310_v28 }
 0x858   : > { %v3300_v16 = vpop.eup %3299 }
 0x859   : > { %2430 = vst [vmem:[%s4097_s18 + $0x78] sm:$0xff] %v2414_v57  ;;  %v2412_v4 = vmul.f32 %v3300_v16, %v1308_v58 }
 0x85b   : > { %2428 = vst [vmem:[%s4097_s18 + $0x68] sm:$0xff] %v2412_v4 }
 0x85c   : > { %3410 = shalt.err (!%p3407_p5)
}
 0x85d   : > { %s3411_s17 = scalar_lea.hbm %s4142_s29, 2048  ;;  %s3415_s26 = scalar_lea.hbm %s4191_s3, 8192 }
 0x85e   : > { %p3412_p10 = scmp.ne.s32.totalorder %s4142_s29, %s3411_s17  ;;  %p3416_p4 = scmp.lt.s32.totalorder %s4142_s29, %s4191_s3 }
 0x85f   : > { %p3417_p6 = scmp.lt.s32.totalorder %s3415_s26, %s3411_s17 }
 0x860   : > { %p3413_p9 = pnand %p3412_p10, %p4206_p2 }
 0x861   : > { %p3418_p8 = por %p3417_p6, %p3416_p4 }
 0x862   : > { %p3414_p1 = pneg %p3413_p9 }
 0x864   : > { %p3419_p3 = pnand %p3418_p8, %p3414_p1 }
 0x866   : > { %3422 = shalt.err (!%p3419_p3)
}
 0x867   : > { %s3474_s30 = smov 128   ;;  %s3475_s18 = smov 8  }
 0x868   : > { %2935 = dma.vmem_to_hbm [thread:$0]  (%p4206_p2), %s4144_s27, 2048, %s4142_s29, %s2432_s16, %s3474_s30, %s3474_s30, %s3475_s18  }
 0x869 PF: > { %p2957_p7 = scmp.ge.s32.totalorder %s3465_s15, 2  ;;  %s2460_s20 = sand.u32 1, %s3453_s12  }
 0x86a   : > { %p4207_p11 = scmp.ne.s32.totalorder %s4197_s19, 0  ;;  %s2461_s28 = scalar_lea.sflag [#allocation4], %s2460_s20 }
 0x86c   : > { %p2949_p12 = pnand %p2957_p7, %p4207_p11 }
 0x86e   : > { %p2950_p13 = pneg %p2949_p12 }
 0x870   : > { %3448 = dma.done.wait (%p2950_p13), %s2461_s28, 2048  }
 0x871   : > { %3450 = vsyncadd (%p2950_p13), %s2461_s28, 4294965248  ;;  %p17_p0 = scmp.ge.s32.totalorder %s3570_s7, 6   ;;  %s4208_s12 = smov %s3457_s13 }
 0x872   : > { %s4209_s13 = smov %s3461_s14  ;;  %s4210_s14 = smov %s3586_s11 }
 0x873   : > { %s4211_s15 = smov %s3570_s7  ;;  %19 = sbr.rel (!%p17_p0) target bundleno = 6 (0x6), region = 88 }
 0x878   :  { %2466 = vsyncpa [#allocation3], 1 }
 0x879   :  { %2468 = vsyncpa [#allocation3 + $0x1], 1 }
 0x87a   :  { %2469 = vsyncpa [#allocation6], 1 }
 0x87b   :  { %2470 = vsyncpa [#allocation4], 1 }
 0x87c   :  { %2472 = vsyncpa [#allocation4 + $0x1], 1 }

</bundles_post_ra>
